<compile_context>
chip_gen: v5e
topology: v5e:2x2
jax: 0.10.0
libtpu: 0.0.40
codegen_flags: <defaults>
</compile_context>

<pallas_src>
import jax
import jax.numpy as jnp
from jax.experimental import pallas as pl
from jax.experimental.pallas import tpu as pltpu

IN_DIM = 100      # input feature dim (nn.Linear(100, 256))
HID = 256         # hidden dim (lane-aligned)
OUT_DIM = 784     # output dim (6*128 + 16; tail store is masked, no padding needed)
TM = 128          # batch tile (rows per grid step)


def generator_kernel(x_ref, w1_ref, b1_ref, w2_ref, b2_ref, w3_ref, b3_ref, o_ref):
    # Linear(100 -> 256) + ReLU
    h1 = jnp.dot(x_ref[...], w1_ref[...], preferred_element_type=jnp.float32)
    h1 = jnp.maximum(h1 + b1_ref[...], 0.0)
    # Linear(256 -> 256) + ReLU
    h2 = jnp.dot(h1, w2_ref[...], preferred_element_type=jnp.float32)
    h2 = jnp.maximum(h2 + b2_ref[...], 0.0)
    # Linear(256 -> 784) + Tanh
    h3 = jnp.dot(h2, w3_ref[...], preferred_element_type=jnp.float32)
    o_ref[...] = jnp.tanh(h3 + b3_ref[...]).astype(o_ref.dtype)


def generator_forward(x, params):
    w1, b1, w2, b2, w3, b3 = params
    B = x.shape[0]
    Bp = pl.cdiv(B, TM) * TM

    # Pad the batch to a multiple of TM only when needed (x is tiny; output is not copied).
    xp = x if Bp == B else jnp.zeros((Bp, IN_DIM), x.dtype).at[:B, :].set(x)

    const = lambda i: (0, 0)  # weights/biases: same block every step -> stay VMEM-resident

    out = pl.pallas_call(
        generator_kernel,
        out_shape=jax.ShapeDtypeStruct((Bp, OUT_DIM), jnp.float32),
        grid=(Bp // TM,),
        in_specs=[
            pl.BlockSpec((TM, IN_DIM), lambda i: (i, 0)),   # x tile: moves with batch step
            pl.BlockSpec((IN_DIM, HID), const),             # w1 (100, 256)
            pl.BlockSpec((1, HID), const),                  # b1
            pl.BlockSpec((HID, HID), const),                # w2 (256, 256)
            pl.BlockSpec((1, HID), const),                  # b2
            pl.BlockSpec((HID, OUT_DIM), const),            # w3 (256, 784)
            pl.BlockSpec((1, OUT_DIM), const),              # b3
        ],
        out_specs=pl.BlockSpec((TM, OUT_DIM), lambda i: (i, 0)),
        compiler_params=pltpu.CompilerParams(
            dimension_semantics=("parallel",),  # shard batch axis across TCs on v7x
        ),
    )(xp, w1, b1, w2, b2, w3, b3)

    # Strip batch padding if any; torch's squeeze(-1) is a no-op (last dim 784 != 1).
    return out if Bp == B else out[:B]


def init_params(key):
    # Deterministic init mimicking nn.Linear's U(-1/sqrt(fan_in), 1/sqrt(fan_in)).
    # Weights stored as [in, out] (transposed vs PyTorch's [out, in]); biases as [1, out].
    dims = [(IN_DIM, HID), (HID, HID), (HID, OUT_DIM)]
    params = []
    for fan_in, fan_out in dims:
        key, kw, kb = jax.random.split(key, 3)
        bound = 1.0 / jnp.sqrt(jnp.float32(fan_in))
        w = jax.random.uniform(kw, (fan_in, fan_out), jnp.float32, -bound, bound)
        b = jax.random.uniform(kb, (1, fan_out), jnp.float32, -bound, bound)
        params.extend([w, b])
    return tuple(params)


def reference_forward(x, params):
    w1, b1, w2, b2, w3, b3 = params
    h = jnp.maximum(x @ w1 + b1, 0.0)
    h = jnp.maximum(h @ w2 + b2, 0.0)
    y = jnp.tanh(h @ w3 + b3)
    return jnp.squeeze(y, axis=-1) if y.shape[-1] == 1 else y


if __name__ == "__main__":
    key = jax.random.PRNGKey(0)
    key, kx = jax.random.split(key)
    # B=200 exercises both batch padding (200 -> 256) and a 2-step batch grid.
    B = 200
    x = jax.random.normal(kx, (B, IN_DIM), jnp.float32)
    params = init_params(key)

    out = generator_forward(x, params)
    out = jax.block_until_ready(out)

    ref = reference_forward(x, params)
    assert out.shape == (B, OUT_DIM), out.shape
    assert jnp.allclose(out, ref, atol=1e-5, rtol=1e-5)
    print("KERNEL_OK")
</pallas_src>

<mosaic_0001>
module attributes {stable_mosaic.version = 11 : i64} {
  func.func @generator_kernel(%arg0: i32, %arg1: memref<128x100xf32, #tpu.memory_space<vmem>>, %arg2: memref<100x256xf32, #tpu.memory_space<vmem>>, %arg3: memref<1x256xf32, #tpu.memory_space<vmem>>, %arg4: memref<256x256xf32, #tpu.memory_space<vmem>>, %arg5: memref<1x256xf32, #tpu.memory_space<vmem>>, %arg6: memref<256x784xf32, #tpu.memory_space<vmem>>, %arg7: memref<1x784xf32, #tpu.memory_space<vmem>>, %arg8: memref<128x784xf32, #tpu.memory_space<vmem>>) attributes {dimension_semantics = [#tpu.dimension_semantics<parallel>], iteration_bounds = array<i64: 2>, scalar_prefetch = 0 : i64, scratch_operands = 0 : i64, tpu.core_type = #tpu.core_type<tc>, window_params = [{transform_indices = @transform_0, window_bounds = array<i64: 128, 100>}, {pipeline_mode = #tpu.pipeline_mode<synchronous>, transform_indices = @transform_1, window_bounds = array<i64: 100, 256>}, {pipeline_mode = #tpu.pipeline_mode<synchronous>, transform_indices = @transform_2, window_bounds = array<i64: 1, 256>}, {pipeline_mode = #tpu.pipeline_mode<synchronous>, transform_indices = @transform_3, window_bounds = array<i64: 256, 256>}, {pipeline_mode = #tpu.pipeline_mode<synchronous>, transform_indices = @transform_4, window_bounds = array<i64: 1, 256>}, {pipeline_mode = #tpu.pipeline_mode<synchronous>, transform_indices = @transform_5, window_bounds = array<i64: 256, 784>}, {pipeline_mode = #tpu.pipeline_mode<synchronous>, transform_indices = @transform_6, window_bounds = array<i64: 1, 784>}, {transform_indices = @transform_7, window_bounds = array<i64: 128, 784>}]} {
    %c0 = arith.constant 0 : index
    %c0_0 = arith.constant 0 : index
    %0 = vector.load %arg1[%c0, %c0_0] : memref<128x100xf32, #tpu.memory_space<vmem>>, vector<128x100xf32>
    %c0_1 = arith.constant 0 : index
    %c0_2 = arith.constant 0 : index
    %1 = vector.load %arg2[%c0_1, %c0_2] : memref<100x256xf32, #tpu.memory_space<vmem>>, vector<100x256xf32>
    %cst = arith.constant dense<0.000000e+00> : vector<128x256xf32>
    %2 = tpu.matmul %0, %1, %cst {dimension_numbers = #tpu.dot_dimension_numbers<[1], [0], [0], [1], [0, 0, 1, 1], [], []>} : vector<128x100xf32>, vector<100x256xf32>, vector<128x256xf32> -> vector<128x256xf32>
    %c0_3 = arith.constant 0 : index
    %c0_4 = arith.constant 0 : index
    %3 = vector.load %arg3[%c0_3, %c0_4] : memref<1x256xf32, #tpu.memory_space<vmem>>, vector<1x256xf32>
    %4 = vector.broadcast %3 : vector<1x256xf32> to vector<128x256xf32>
    %5 = arith.addf %2, %4 : vector<128x256xf32>
    %cst_5 = arith.constant 0.000000e+00 : f32
    %6 = vector.broadcast %cst_5 : f32 to vector<128x256xf32>
    %7 = arith.maximumf %5, %6 : vector<128x256xf32>
    %c0_6 = arith.constant 0 : index
    %c0_7 = arith.constant 0 : index
    %8 = vector.load %arg4[%c0_6, %c0_7] : memref<256x256xf32, #tpu.memory_space<vmem>>, vector<256x256xf32>
    %cst_8 = arith.constant dense<0.000000e+00> : vector<128x256xf32>
    %9 = tpu.matmul %7, %8, %cst_8 {dimension_numbers = #tpu.dot_dimension_numbers<[1], [0], [0], [1], [0, 0, 1, 1], [], []>} : vector<128x256xf32>, vector<256x256xf32>, vector<128x256xf32> -> vector<128x256xf32>
    %c0_9 = arith.constant 0 : index
    %c0_10 = arith.constant 0 : index
    %10 = vector.load %arg5[%c0_9, %c0_10] : memref<1x256xf32, #tpu.memory_space<vmem>>, vector<1x256xf32>
    %11 = vector.broadcast %10 : vector<1x256xf32> to vector<128x256xf32>
    %12 = arith.addf %9, %11 : vector<128x256xf32>
    %cst_11 = arith.constant 0.000000e+00 : f32
    %13 = vector.broadcast %cst_11 : f32 to vector<128x256xf32>
    %14 = arith.maximumf %12, %13 : vector<128x256xf32>
    %c0_12 = arith.constant 0 : index
    %c0_13 = arith.constant 0 : index
    %15 = vector.load %arg6[%c0_12, %c0_13] : memref<256x784xf32, #tpu.memory_space<vmem>>, vector<256x784xf32>
    %cst_14 = arith.constant dense<0.000000e+00> : vector<128x784xf32>
    %16 = tpu.matmul %14, %15, %cst_14 {dimension_numbers = #tpu.dot_dimension_numbers<[1], [0], [0], [1], [0, 0, 1, 1], [], []>} : vector<128x256xf32>, vector<256x784xf32>, vector<128x784xf32> -> vector<128x784xf32>
    %c0_15 = arith.constant 0 : index
    %c0_16 = arith.constant 0 : index
    %17 = vector.load %arg7[%c0_15, %c0_16] : memref<1x784xf32, #tpu.memory_space<vmem>>, vector<1x784xf32>
    %18 = vector.broadcast %17 : vector<1x784xf32> to vector<128x784xf32>
    %19 = arith.addf %16, %18 : vector<128x784xf32>
    %20 = math.tanh %19 : vector<128x784xf32>
    %c0_17 = arith.constant 0 : index
    %c0_18 = arith.constant 0 : index
    %21 = vector.load %arg8[%c0_17, %c0_18] : memref<128x784xf32, #tpu.memory_space<vmem>>, vector<128x784xf32>
    tpu.vector_store %arg8[%c0_17, %c0_18], %20 {strides = array<i32>} : memref<128x784xf32, #tpu.memory_space<vmem>>, vector<128x784xf32>,
    return
  }
  func.func @transform_0(%arg0: i32) -> (i32, i32) {
    %c0_i32 = arith.constant 0 : i32
    %c0_i32_0 = arith.constant 0 : i32
    return %arg0, %c0_i32 : i32, i32
  }
  func.func @transform_1(%arg0: i32) -> (i32, i32) {
    %c0_i32 = arith.constant 0 : i32
    %c0_i32_0 = arith.constant 0 : i32
    %c0_i32_1 = arith.constant 0 : i32
    return %c0_i32, %c0_i32_0 : i32, i32
  }
  func.func @transform_2(%arg0: i32) -> (i32, i32) {
    %c0_i32 = arith.constant 0 : i32
    %c0_i32_0 = arith.constant 0 : i32
    %c0_i32_1 = arith.constant 0 : i32
    return %c0_i32, %c0_i32_0 : i32, i32
  }
  func.func @transform_3(%arg0: i32) -> (i32, i32) {
    %c0_i32 = arith.constant 0 : i32
    %c0_i32_0 = arith.constant 0 : i32
    %c0_i32_1 = arith.constant 0 : i32
    return %c0_i32, %c0_i32_0 : i32, i32
  }
  func.func @transform_4(%arg0: i32) -> (i32, i32) {
    %c0_i32 = arith.constant 0 : i32
    %c0_i32_0 = arith.constant 0 : i32
    %c0_i32_1 = arith.constant 0 : i32
    return %c0_i32, %c0_i32_0 : i32, i32
  }
  func.func @transform_5(%arg0: i32) -> (i32, i32) {
    %c0_i32 = arith.constant 0 : i32
    %c0_i32_0 = arith.constant 0 : i32
    %c0_i32_1 = arith.constant 0 : i32
    return %c0_i32, %c0_i32_0 : i32, i32
  }
  func.func @transform_6(%arg0: i32) -> (i32, i32) {
    %c0_i32 = arith.constant 0 : i32
    %c0_i32_0 = arith.constant 0 : i32
    %c0_i32_1 = arith.constant 0 : i32
    return %c0_i32, %c0_i32_0 : i32, i32
  }
  func.func @transform_7(%arg0: i32) -> (i32, i32) {
    %c0_i32 = arith.constant 0 : i32
    %c0_i32_0 = arith.constant 0 : i32
    return %arg0, %c0_i32 : i32, i32
  }
}

</mosaic_0001>

<bundles_post_ra>
// kernel: tpu_custom_call.1
= control target key start
LH: loop header
LB: loop body
LE: loop exit
PB: predicated region body
PF: predicated region fallthrough
CT: control target
= control target key end

     0   :  { %s2672_s24 = smov 0   ;;  %s4324_s0 = inlined_call_operand.vmem [shape: f32[256,100], index: 0, kind: input, shape index: {}]   ;;  %s4325_s1 = inlined_call_operand.vmem [shape: f32[100,256], index: 1, kind: input, shape index: {}]   ;;  %s4326_s2 = inlined_call_operand.vmem [shape: f32[1,256], index: 2, kind: input, shape index: {}]   ;;  %s4327_s3 = inlined_call_operand.vmem [shape: f32[256,256], index: 3, kind: input, shape index: {}]   ;;  %s4328_s4 = inlined_call_operand.vmem [shape: f32[1,256], index: 4, kind: input, shape index: {}]   ;;  %s4329_s5 = inlined_call_operand.vmem [shape: f32[256,784], index: 5, kind: input, shape index: {}]   ;;  %s4330_s6 = inlined_call_operand.vmem [shape: f32[1,784], index: 6, kind: input, shape index: {}]   ;;  %s4331_s7 = inlined_call_operand.vmem [shape: f32[256,784], index: 7, kind: output, shape index: {}]  }
   0x1 LB: > { %s2345_s25 = sadd.s32 4294967295, %s2630_s24   ;;  %p2349_p0 = scmp.ge.s32.totalorder %s2630_s24, 1  ;;  %s2630_s24 = sphi %s2672_s24, %s17_s24  }
   0x2   : > { %p238_p1 = scmp.lt.s32.totalorder %s2630_s24, 3 }
   0x4   : > { %p239_p2 = pnand %p2349_p0, %p238_p1 }
   0x5   : > { %s2350_s23 = sshll.u32 (!%p239_p2), %s2345_s25, 4 }
   0x6   : > { %242 = sbr.rel (%p239_p2) target bundleno = 953 (0x3b9), region = 48  ;;  %p272_p3 = scmp.lt.s32.totalorder (!%p239_p2), %s2350_s23, 31 }
   0xb   : > { %v324_v0 = vld [vmem:[%s4325_s1 + $0xc0] sm:$0xf]  ;;  %vm381_vm0 = vcmask 1043456   ;;  %v322_v1 = vld [vmem:[%s4325_s1 + $0xb0] sm:$0xff]  ;;  %v325_v2 = vld [vmem:[%s4325_s1 + $0xc8] sm:$0xf] }
   0xc   : > { %2354 = vmatpush.msk.msra.mxu0 %vm381_vm0, %v324_v0  ;;  %2371 = vmatpush.msk.msra.mxu1 %vm381_vm0, %v325_v2  ;;  %v323_v3 = vld [vmem:[%s4325_s1 + $0xb8] sm:$0xff]  ;;  %v320_v4 = vld [vmem:[%s4325_s1 + $0xa0] sm:$0xff]  ;;  %v321_v5 = vld [vmem:[%s4325_s1 + $0xa8] sm:$0xff]  ;;  %s4333_s23 = smov (!%p272_p3, %s2350_s23), 31  ;;  %vm332_vm1 = vcmask 818176   ;;  %vm2180_vm2 = vcmask 130048  }
   0xd   : > { %v318_v6 = vld [vmem:[%s4325_s1 + $0x90] sm:$0xff]  ;;  %v319_v7 = vld [vmem:[%s4325_s1 + $0x98] sm:$0xff]  ;;  %v316_v8 = vld [vmem:[%s4325_s1 + $0x80] sm:$0xff]  ;;  %s2351_s22 = sshll.u32 %s4333_s23, 3  ;;  %s2390_s10 = smul.u32 56, %s4333_s23 }
   0xe   : > { %392 = vmatpush.msra.mxu0 %v322_v1  ;;  %457 = vmatpush.msra.mxu1 %v323_v3  ;;  %v317_v9 = vld [vmem:[%s4325_s1 + $0x88] sm:$0xff]  ;;  %v314_v10 = vld [vmem:[%s4325_s1 + $0x70] sm:$0xff]  ;;  %v315_v11 = vld [vmem:[%s4325_s1 + $0x78] sm:$0xff]  ;;  %s2758_s12 = scalar_lea.vmem %s4324_s0, %s2351_s22 }
   0xf   : > { %v312_v12 = vld [vmem:[%s4325_s1 + $0x60] sm:$0xff]  ;;  %v313_v13 = vld [vmem:[%s4325_s1 + $0x68] sm:$0xff]  ;;  %v310_v14 = vld [vmem:[%s4325_s1 + $0x50] sm:$0xff]  ;;  %s3643_s13 = scalar_lea.vmem %s4331_s7, %s2390_s10 }
  0x10   : > { %393 = vmatpush.msra.mxu0 %v320_v4  ;;  %458 = vmatpush.msra.mxu1 %v321_v5  ;;  %v311_v15 = vld [vmem:[%s4325_s1 + $0x58] sm:$0xff]  ;;  %v308_v16 = vld [vmem:[%s4325_s1 + $0x40] sm:$0xff]  ;;  %v309_v17 = vld [vmem:[%s4325_s1 + $0x48] sm:$0xff] }
  0x11   : > { %v306_v18 = vld [vmem:[%s4325_s1 + $0x30] sm:$0xff]  ;;  %v307_v19 = vld [vmem:[%s4325_s1 + $0x38] sm:$0xff]  ;;  %v304_v20 = vld [vmem:[%s4325_s1 + $0x20] sm:$0xff] }
  0x12   : > { %394 = vmatpush.msra.mxu0 %v318_v6  ;;  %459 = vmatpush.msra.mxu1 %v319_v7  ;;  %v305_v21 = vld [vmem:[%s4325_s1 + $0x28] sm:$0xff]  ;;  %v302_v22 = vld [vmem:[%s4325_s1 + $0x10] sm:$0xff]  ;;  %v303_v23 = vld [vmem:[%s4325_s1 + $0x18] sm:$0xff] }
  0x13   : > { %v300_v24 = vld [vmem:[%s4325_s1] sm:$0xff]  ;;  %v301_v25 = vld [vmem:[%s4325_s1 + $0x8] sm:$0xff]  ;;  %v581_v27 = vld [vmem:[%s4327_s3 + $0xf8] sm:$0xff] }
  0x14   : > { %395 = vmatpush.msra.mxu0 %v316_v8  ;;  %460 = vmatpush.msra.mxu1 %v317_v9  ;;  %v284_v26 = vld [vmem:[%s2758_s12] sm:$0xff]  ;;  %v613_v28 = vld [vmem:[%s4327_s3 + $0x1f8] sm:$0xff]  ;;  %v579_v29 = vld [vmem:[%s4327_s3 + $0xe8] sm:$0xff] }
  0x15   : > { %v611_v30 = vld [vmem:[%s4327_s3 + $0x1e8] sm:$0xff]  ;;  %v577_v31 = vld [vmem:[%s4327_s3 + $0xd8] sm:$0xff]  ;;  %v286_v38 = vld [vmem:[%s2758_s12 + $0x10] sm:$0xff] }
  0x16   : > { %396 = vmatpush.msra.mxu0 %v314_v10  ;;  %461 = vmatpush.msra.mxu1 %v315_v11  ;;  %v609_v32 = vld [vmem:[%s4327_s3 + $0x1d8] sm:$0xff]  ;;  %v575_v33 = vld [vmem:[%s4327_s3 + $0xc8] sm:$0xff]  ;;  %v288_v44 = vld [vmem:[%s2758_s12 + $0x20] sm:$0xff] }
  0x17   : > { %v607_v34 = vld [vmem:[%s4327_s3 + $0x1c8] sm:$0xff]  ;;  %v573_v36 = vld [vmem:[%s4327_s3 + $0xb8] sm:$0xff]  ;;  %v290_v50 = vld [vmem:[%s2758_s12 + $0x30] sm:$0xff] }
  0x18   : > { %397 = vmatpush.msra.mxu0 %v312_v12  ;;  %462 = vmatpush.msra.mxu1 %v313_v13  ;;  %v285_v35 = vld [vmem:[%s2758_s12 + $0x8] sm:$0xff]  ;;  %v605_v37 = vld [vmem:[%s4327_s3 + $0x1b8] sm:$0xff]  ;;  %v292_v56 = vld [vmem:[%s2758_s12 + $0x40] sm:$0xff] }
  0x19   : > { %v571_v39 = vld [vmem:[%s4327_s3 + $0xa8] sm:$0xff]  ;;  %v287_v41 = vld [vmem:[%s2758_s12 + $0x18] sm:$0xff]  ;;  %v580_v58 = vld [vmem:[%s4327_s3 + $0xf0] sm:$0xff] }
  0x1a   : > { %398 = vmatpush.msra.mxu0 %v310_v14  ;;  %463 = vmatpush.msra.mxu1 %v311_v15  ;;  %v603_v40 = vld [vmem:[%s4327_s3 + $0x1a8] sm:$0xff]  ;;  %v569_v42 = vld [vmem:[%s4327_s3 + $0x98] sm:$0xff]  ;;  %v578_v60 = vld [vmem:[%s4327_s3 + $0xe0] sm:$0xff] }
  0x1b   : > { %v601_v43 = vld [vmem:[%s4327_s3 + $0x198] sm:$0xff]  ;;  %v567_v45 = vld [vmem:[%s4327_s3 + $0x88] sm:$0xff]  ;;  %620 = vmatpush.msra.mxu2 %v580_v58  ;;  %v612_v61 = vld [vmem:[%s4327_s3 + $0x1f0] sm:$0xff] }
  0x1c   : > { %399 = vmatpush.msra.mxu0 %v308_v16  ;;  %464 = vmatpush.msra.mxu1 %v309_v17  ;;  %v599_v46 = vld [vmem:[%s4327_s3 + $0x188] sm:$0xff]  ;;  %v565_v48 = vld [vmem:[%s4327_s3 + $0x78] sm:$0xff]  ;;  %v576_v62 = vld [vmem:[%s4327_s3 + $0xd0] sm:$0xff] }
  0x1d   : > { %v289_v47 = vld [vmem:[%s2758_s12 + $0x28] sm:$0xff]  ;;  %v597_v49 = vld [vmem:[%s4327_s3 + $0x178] sm:$0xff]  ;;  %685 = vmatpush.msra.mxu3 %v612_v61  ;;  %v610_v63 = vld [vmem:[%s4327_s3 + $0x1e0] sm:$0xff]  ;;  %621 = vmatpush.msra.mxu2 %v578_v60 }
  0x1e   : > { %400 = vmatpush.msra.mxu0 %v306_v18  ;;  %465 = vmatpush.msra.mxu1 %v307_v19  ;;  %v563_v51 = vld [vmem:[%s4327_s3 + $0x68] sm:$0xff]  ;;  %v291_v53 = vld [vmem:[%s2758_s12 + $0x38] sm:$0xff]  ;;  %v574_v1 = vld [vmem:[%s4327_s3 + $0xc0] sm:$0xff] }
  0x1f   : > { %v595_v52 = vld [vmem:[%s4327_s3 + $0x168] sm:$0xff]  ;;  %v561_v54 = vld [vmem:[%s4327_s3 + $0x58] sm:$0xff]  ;;  %686 = vmatpush.msra.mxu3 %v610_v63  ;;  %622 = vmatpush.msra.mxu2 %v576_v62  ;;  %v608_v2 = vld [vmem:[%s4327_s3 + $0x1d0] sm:$0xff] }
  0x20   : > { %401 = vmatpush.msra.mxu0 %v304_v20  ;;  %466 = vmatpush.msra.mxu1 %v305_v21  ;;  %v593_v55 = vld [vmem:[%s4327_s3 + $0x158] sm:$0xff]  ;;  %v559_v57 = vld [vmem:[%s4327_s3 + $0x48] sm:$0xff]  ;;  %v572_v4 = vld [vmem:[%s4327_s3 + $0xb0] sm:$0xff] }
  0x21   : > { %v591_v59 = vld [vmem:[%s4327_s3 + $0x148] sm:$0xff]  ;;  %v557_v3 = vld [vmem:[%s4327_s3 + $0x38] sm:$0xff]  ;;  %623 = vmatpush.msra.mxu2 %v574_v1  ;;  %687 = vmatpush.msra.mxu3 %v608_v2  ;;  %v606_v5 = vld [vmem:[%s4327_s3 + $0x1c0] sm:$0xff] }
  0x22   : > { %402 = vmatpush.msra.mxu0 %v302_v22  ;;  %467 = vmatpush.msra.mxu1 %v303_v23  ;;  %v293_v0 = vld [vmem:[%s2758_s12 + $0x48] sm:$0xff]  ;;  %v589_v6 = vld [vmem:[%s4327_s3 + $0x138] sm:$0xff]  ;;  %v570_v7 = vld [vmem:[%s4327_s3 + $0xa0] sm:$0xff] }
  0x23   : > { %v604_v8 = vld [vmem:[%s4327_s3 + $0x1b0] sm:$0xff]  ;;  %624 = vmatpush.msra.mxu2 %v572_v4  ;;  %688 = vmatpush.msra.mxu3 %v606_v5  ;;  %v602_v10 = vld [vmem:[%s4327_s3 + $0x1a0] sm:$0xff]  ;;  %v555_v14 = vld [vmem:[%s4327_s3 + $0x28] sm:$0xff] }
  0x24   : > { %403 = vmatpush.msra.mxu0 %v300_v24  ;;  %468 = vmatpush.msra.mxu1 %v301_v25  ;;  %v568_v9 = vld [vmem:[%s4327_s3 + $0x90] sm:$0xff]  ;;  %v566_v12 = vld [vmem:[%s4327_s3 + $0x80] sm:$0xff]  ;;  %v587_v17 = vld [vmem:[%s4327_s3 + $0x128] sm:$0xff] }
  0x25   : > { %2355 = vmatmul.msk.f32.vlgmr.msra.gmra.mxu0 %vm332_vm1, %v284_v26  ;;  %2372 = vmatmul.msk.f32.vlgmr.msra.gmra.mxu1 %vm332_vm1, %v284_v26  ;;  %v294_v11 = vld [vmem:[%s2758_s12 + $0x50] sm:$0xff]  ;;  %v598_v16 = vld [vmem:[%s4327_s3 + $0x180] sm:$0xff]  ;;  %v295_v22 = vld [vmem:[%s2758_s12 + $0x58] sm:$0xff] }
  0x26   : > { %750 = vmatpush.msrb.mxu0 %v581_v27  ;;  %815 = vmatpush.msrb.mxu1 %v613_v28  ;;  %v600_v13 = vld [vmem:[%s4327_s3 + $0x190] sm:$0xff]  ;;  %v562_v18 = vld [vmem:[%s4327_s3 + $0x60] sm:$0xff]  ;;  %v553_v25 = vld [vmem:[%s4327_s3 + $0x18] sm:$0xff] }
  0x27   : > { %625 = vmatpush.msra.mxu2 %v570_v7  ;;  %689 = vmatpush.msra.mxu3 %v604_v8  ;;  %v564_v15 = vld [vmem:[%s4327_s3 + $0x70] sm:$0xff]  ;;  %v594_v21 = vld [vmem:[%s4327_s3 + $0x160] sm:$0xff]  ;;  %v585_v28 = vld [vmem:[%s4327_s3 + $0x118] sm:$0xff] }
  0x28   : > { %751 = vmatpush.msrb.mxu0 %v579_v29  ;;  %816 = vmatpush.msrb.mxu1 %v611_v30  ;;  %v596_v19 = vld [vmem:[%s4327_s3 + $0x170] sm:$0xff]  ;;  %v558_v23 = vld [vmem:[%s4327_s3 + $0x40] sm:$0xff]  ;;  %v989_v1 = vld [vmem:[%s4329_s5 + $0x268] sm:$0xff] }
  0x29   : > { %626 = vmatpush.msra.mxu2 %v568_v9  ;;  %690 = vmatpush.msra.mxu3 %v602_v10  ;;  %v560_v20 = vld [vmem:[%s4327_s3 + $0x50] sm:$0xff]  ;;  %v590_v27 = vld [vmem:[%s4327_s3 + $0x140] sm:$0xff] }
  0x2a   : > { %752 = vmatpush.msrb.mxu0 %v577_v31  ;;  %817 = vmatpush.msrb.mxu1 %v609_v32  ;;  %v592_v24 = vld [vmem:[%s4327_s3 + $0x150] sm:$0xff]  ;;  %v554_v29 = vld [vmem:[%s4327_s3 + $0x20] sm:$0xff] }
  0x2b   : > { %627 = vmatpush.msra.mxu2 %v566_v12  ;;  %691 = vmatpush.msra.mxu3 %v600_v13  ;;  %v556_v26 = vld [vmem:[%s4327_s3 + $0x30] sm:$0xff]  ;;  %v296_v31 = vld [vmem:[%s2758_s12 + $0x60] sm:$0xff] }
  0x2c   : > { %753 = vmatpush.msrb.mxu0 %v575_v33  ;;  %818 = vmatpush.msrb.mxu1 %v607_v34  ;;  %v588_v30 = vld [vmem:[%s4327_s3 + $0x130] sm:$0xff]  ;;  %v586_v33 = vld [vmem:[%s4327_s3 + $0x120] sm:$0xff] }
  0x2d   : > { %2356 = vmatmul.msk.f32.gmra.mxu0 %vm332_vm1, %v285_v35  ;;  %2373 = vmatmul.msk.f32.gmra.mxu1 %vm332_vm1, %v285_v35  ;;  %v552_v32 = vld [vmem:[%s4327_s3 + $0x10] sm:$0xff]  ;;  %v550_v34 = vld [vmem:[%s4327_s3] sm:$0xff] }
  0x2e   : > { %754 = vmatpush.msrb.mxu0 %v573_v36  ;;  %819 = vmatpush.msrb.mxu1 %v605_v37  ;;  %v584_v35 = vld [vmem:[%s4327_s3 + $0x110] sm:$0xff]  ;;  %v551_v36 = vld [vmem:[%s4327_s3 + $0x8] sm:$0xff]  ;;  %v582_v37 = vld [vmem:[%s4327_s3 + $0x100] sm:$0xff] }
  0x2f   : > { %628 = vmatpush.msra.mxu2 %v564_v15  ;;  %692 = vmatpush.msra.mxu3 %v598_v16  ;;  %v1108_v62 = vld [vmem:[%s4329_s5 + $0x620] sm:$0xff]  ;;  %v982_v9 = vld [vmem:[%s4329_s5 + $0x230] sm:$0xff] }
  0x30   : > { %755 = vmatpush.msrb.mxu0 %v571_v39  ;;  %820 = vmatpush.msrb.mxu1 %v603_v40  ;;  %v297_v39 = vld [vmem:[%s2758_s12 + $0x68] sm:$0xff] }
  0x31   : > { %629 = vmatpush.msra.mxu2 %v562_v18  ;;  %693 = vmatpush.msra.mxu3 %v596_v19  ;;  %v1017_v40 = vld [vmem:[%s4329_s5 + $0x348] sm:$0xff] }
  0x32   : > { %756 = vmatpush.msrb.mxu0 %v569_v42  ;;  %821 = vmatpush.msrb.mxu1 %v601_v43  ;;  %v1129_v42 = vld [vmem:[%s4329_s5 + $0x6c8] sm:$0xff]  ;;  %v1010_v43 = vld [vmem:[%s4329_s5 + $0x310] sm:$0xff] }
  0x33   : > { %630 = vmatpush.msra.mxu2 %v560_v20  ;;  %694 = vmatpush.msra.mxu3 %v594_v21 }
  0x34   : > { %757 = vmatpush.msrb.mxu0 %v567_v45  ;;  %822 = vmatpush.msrb.mxu1 %v599_v46  ;;  %v1122_v45 = vld [vmem:[%s4329_s5 + $0x690] sm:$0xff]  ;;  %v326_v46 = vld [vmem:[%s4326_s2] sm:$0x3] }
  0x35   : > { %2357 = vmatmul.msk.f32.gmra.mxu0 %vm332_vm1, %v286_v38  ;;  %2374 = vmatmul.msk.f32.gmra.mxu1 %vm332_vm1, %v286_v38  ;;  %v583_v38 = vld [vmem:[%s4327_s3 + $0x108] sm:$0xff] }
  0x36   : > { %758 = vmatpush.msrb.mxu0 %v565_v48  ;;  %823 = vmatpush.msrb.mxu1 %v597_v49  ;;  %v3023_v48 = vperm.slane %v326_v46, 1  ;;  %v1003_v49 = vld [vmem:[%s4329_s5 + $0x2d8] sm:$0xff] }
  0x37   : > { %631 = vmatpush.msra.mxu2 %v558_v23  ;;  %695 = vmatpush.msra.mxu3 %v592_v24 }
  0x38   : > { %759 = vmatpush.msrb.mxu0 %v563_v51  ;;  %824 = vmatpush.msrb.mxu1 %v595_v52 }
  0x39   : > { %632 = vmatpush.msra.mxu2 %v556_v26  ;;  %696 = vmatpush.msra.mxu3 %v590_v27 }
  0x3a   : > { %760 = vmatpush.msrb.mxu0 %v561_v54  ;;  %825 = vmatpush.msrb.mxu1 %v593_v55  ;;  %v1115_v54 = vld [vmem:[%s4329_s5 + $0x658] sm:$0xff] }
  0x3b   : > { %633 = vmatpush.msra.mxu2 %v554_v29  ;;  %697 = vmatpush.msra.mxu3 %v588_v30  ;;  %v1080_v30 = vld [vmem:[%s4329_s5 + $0x540] sm:$0xff] }
  0x3c   : > { %761 = vmatpush.msrb.mxu0 %v559_v57  ;;  %826 = vmatpush.msrb.mxu1 %v591_v59  ;;  %v996_v57 = vld [vmem:[%s4329_s5 + $0x2a0] sm:$0xff] }
  0x3d   : > { %2358 = vmatmul.msk.f32.gmra.mxu0 %vm332_vm1, %v287_v41  ;;  %2375 = vmatmul.msk.f32.gmra.mxu1 %vm332_vm1, %v287_v41  ;;  %v298_v41 = vld [vmem:[%s2758_s12 + $0x70] sm:$0xff] }
  0x3e   : > { %762 = vmatpush.msrb.mxu0 %v557_v3  ;;  %827 = vmatpush.msrb.mxu1 %v589_v6  ;;  %v1101_v6 = vld [vmem:[%s4329_s5 + $0x5e8] sm:$0xff] }
  0x3f   : > { %634 = vmatpush.msra.mxu2 %v552_v32  ;;  %698 = vmatpush.msra.mxu3 %v586_v33  ;;  %v961_v33 = vld [vmem:[%s4329_s5 + $0x188] sm:$0xff] }
  0x40   : > { %763 = vmatpush.msrb.mxu0 %v555_v14  ;;  %828 = vmatpush.msrb.mxu1 %v587_v17  ;;  %v1094_v14 = vld [vmem:[%s4329_s5 + $0x5b0] sm:$0xff]  ;;  %v975_v17 = vld [vmem:[%s4329_s5 + $0x1f8] sm:$0xff] }
  0x41   : > { %635 = vmatpush.msra.mxu2 %v550_v34  ;;  %699 = vmatpush.msra.mxu3 %v584_v35 }
  0x42   : > { %764 = vmatpush.msrb.mxu0 %v553_v25  ;;  %829 = vmatpush.msrb.mxu1 %v585_v28  ;;  %v968_v25 = vld [vmem:[%s4329_s5 + $0x1c0] sm:$0xff] }
  0x43   : > { %700 = vmatpush.msra.mxu3 %v582_v37  ;;  %1152 = vmatpush.msrb.mxu2 %v1017_v40 }
  0x44   : > { %765 = vmatpush.msrb.mxu0 %v551_v36  ;;  %830 = vmatpush.msrb.mxu1 %v583_v38  ;;  %v1073_v38 = vld [vmem:[%s4329_s5 + $0x508] sm:$0xff] }
  0x45   : > { %2359 = vmatmul.msk.f32.gmra.mxu0 %vm332_vm1, %v288_v44  ;;  %2376 = vmatmul.msk.f32.gmra.mxu1 %vm332_vm1, %v288_v44  ;;  %v299_v44 = vld [vmem:[%s2758_s12 + $0x78] sm:$0xff] }
  0x46   : > { %1217 = vmatpush.msrb.mxu3 %v1129_v42  ;;  %1153 = vmatpush.msrb.mxu2 %v1010_v43 }
  0x48   : > { %1218 = vmatpush.msrb.mxu3 %v1122_v45  ;;  %1154 = vmatpush.msrb.mxu2 %v1003_v49 }
  0x4a   : > { %1219 = vmatpush.msrb.mxu3 %v1115_v54  ;;  %1155 = vmatpush.msrb.mxu2 %v996_v57 }
  0x4c   : > { %1220 = vmatpush.msrb.mxu3 %v1108_v62  ;;  %1156 = vmatpush.msrb.mxu2 %v989_v1  ;;  %v1130_v1 = vld [vmem:[%s4329_s5 + $0x6d0] sm:$0xff] }
  0x4d   : > { %2360 = vmatmul.msk.f32.gmra.mxu0 %vm332_vm1, %v289_v47  ;;  %2377 = vmatmul.msk.f32.gmra.mxu1 %vm332_vm1, %v289_v47  ;;  %v3021_v47 = vperm.slane %v326_v46, 0  ;;  %v1066_v46 = vld [vmem:[%s4329_s5 + $0x4d0] sm:$0xff] }
  0x4e   : > { %1221 = vmatpush.msrb.mxu3 %v1101_v6  ;;  %1157 = vmatpush.msrb.mxu2 %v982_v9  ;;  %v933_v6 = vld [vmem:[%s4329_s5 + $0xa8] sm:$0xff] }
  0x4f   : > { %1347 = vmatpush.msra.mxu1 %v1130_v1  ;;  %v1025_v1 = vld [vmem:[%s4329_s5 + $0x388] sm:$0xff] }
  0x50   : > { %1222 = vmatpush.msrb.mxu3 %v1094_v14  ;;  %1158 = vmatpush.msrb.mxu2 %v975_v17  ;;  %v1011_v14 = vld [vmem:[%s4329_s5 + $0x318] sm:$0xff] }
  0x52   : > { %1159 = vmatpush.msrb.mxu2 %v968_v25 }
  0x54   : > { %1160 = vmatpush.msrb.mxu2 %v961_v33  ;;  %v1074_v33 = vld [vmem:[%s4329_s5 + $0x510] sm:$0xff] }
  0x55   : > { %2361 = vmatmul.msk.f32.gmra.mxu0 %vm332_vm1, %v290_v50  ;;  %2378 = vmatmul.msk.f32.gmra.mxu1 %vm332_vm1, %v290_v50 }
  0x5d   : > { %2362 = vmatmul.msk.f32.gmra.mxu0 %vm332_vm1, %v291_v53  ;;  %2379 = vmatmul.msk.f32.gmra.mxu1 %vm332_vm1, %v291_v53 }
  0x65   : > { %2363 = vmatmul.msk.f32.gmra.mxu0 %vm332_vm1, %v292_v56  ;;  %2380 = vmatmul.msk.f32.gmra.mxu1 %vm332_vm1, %v292_v56 }
  0x6d   : > { %2364 = vmatmul.msk.f32.gmra.mxu0 %vm332_vm1, %v293_v0  ;;  %2381 = vmatmul.msk.f32.gmra.mxu1 %vm332_vm1, %v293_v0 }
  0x75   : > { %2365 = vmatmul.msk.f32.gmra.mxu0 %vm332_vm1, %v294_v11  ;;  %2382 = vmatmul.msk.f32.gmra.mxu1 %vm332_vm1, %v294_v11 }
  0x7d   : > { %2366 = vmatmul.msk.f32.gmra.mxu0 %vm332_vm1, %v295_v22  ;;  %2383 = vmatmul.msk.f32.gmra.mxu1 %vm332_vm1, %v295_v22  ;;  %v1087_v22 = vld [vmem:[%s4329_s5 + $0x578] sm:$0xff] }
  0x7e   : > { %1223 = vmatpush.msrb.mxu3 %v1087_v22  ;;  %v926_v22 = vld [vmem:[%s4329_s5 + $0x70] sm:$0xff] }
  0x80   : > { %1224 = vmatpush.msrb.mxu3 %v1080_v30  ;;  %v983_v30 = vld [vmem:[%s4329_s5 + $0x238] sm:$0xff] }
  0x82   : > { %1225 = vmatpush.msrb.mxu3 %v1073_v38  ;;  %v1031_v38 = vld [vmem:[%s4329_s5 + $0x3b8] sm:$0xff] }
  0x84   : > { %1226 = vmatpush.msrb.mxu3 %v1066_v46 }
  0x85   : > { %2367 = vmatmul.msk.f32.gmra.mxu0 %vm332_vm1, %v296_v31  ;;  %2384 = vmatmul.msk.f32.gmra.mxu1 %vm332_vm1, %v296_v31 }
  0x8d   : > { %2368 = vmatmul.msk.f32.gmra.mxu0 %vm332_vm1, %v297_v39  ;;  %2385 = vmatmul.msk.f32.gmra.mxu1 %vm332_vm1, %v297_v39 }
  0x95   : > { %2369 = vmatmul.msk.f32.gmra.mxu0 %vm332_vm1, %v298_v41  ;;  %2386 = vmatmul.msk.f32.gmra.mxu1 %vm332_vm1, %v298_v41  ;;  %v954_v41 = vld [vmem:[%s4329_s5 + $0x150] sm:$0xff] }
  0x96   : > { %1161 = vmatpush.msrb.mxu2 %v954_v41  ;;  %v1060_v41 = vld [vmem:[%s4329_s5 + $0x4a0] sm:$0xff] }
  0x9d   : > { %2370 = vmatmul.msk.f32.gmra.mxu0 %vm332_vm1, %v299_v44  ;;  %2387 = vmatmul.msk.f32.gmra.mxu1 %vm332_vm1, %v299_v44 }
  0xa2   : > { %v405_v50 = vpop.f32.mrf.mxu0  ;;  %v470_v51 = vpop.f32.mrf.mxu1 }
  0xa3   : > { %v406_v52 = vadd.f32 %v405_v50, %v3021_v47  ;;  %v471_v53 = vadd.f32 %v470_v51, %v3023_v48  ;;  %v947_v51 = vld [vmem:[%s4329_s5 + $0x118] sm:$0xff] }
  0xa4   : > { %1162 = vmatpush.msrb.mxu2 %v947_v51  ;;  %v1046_v51 = vld [vmem:[%s4329_s5 + $0x430] sm:$0xff] }
  0xa5   : > { %v518_v55 = vmax.f32 %v406_v52, 0.0  ;;  %v519_v56 = vmax.f32 %v471_v53, 0.0 }
  0xa7   : > { %636 = vmatmul.f32.vlgmr.msra.gmra.mxu2 %v518_v55  ;;  %766 = vmatmul.f32.vlgmr.msrb.gmra.mxu0 %v518_v55 }
  0xa8   : > { %701 = vmatmul.f32.vlgmr.msra.gmra.mxu3 %v519_v56  ;;  %831 = vmatmul.f32.vlgmr.msrb.gmra.mxu1 %v519_v56  ;;  %v1059_v56 = vld [vmem:[%s4329_s5 + $0x498] sm:$0xff] }
  0xa9   : > { %1227 = vmatpush.msrb.mxu3 %v1059_v56 }
  0xaa   : > { %v408_v58 = vpop.f32.mrf.mxu0  ;;  %v473_v59 = vpop.f32.mrf.mxu1 }
  0xab   : > { %v409_v60 = vadd.f32 %v408_v58, %v3021_v47  ;;  %v474_v61 = vadd.f32 %v473_v59, %v3023_v48  ;;  %v940_v59 = vld [vmem:[%s4329_s5 + $0xe0] sm:$0xff] }
  0xac   : > { %1163 = vmatpush.msrb.mxu2 %v940_v59 }
  0xad   : > { %v520_v63 = vmax.f32 %v409_v60, 0.0  ;;  %v521_v0 = vmax.f32 %v474_v61, 0.0 }
  0xae   : > { %1164 = vmatpush.msrb.mxu2 %v933_v6  ;;  %v920_v6 = vld [vmem:[%s4329_s5 + $0x40] sm:$0xff] }
  0xaf   : > { %639 = vmatmul.f32.gmra.mxu2 %v520_v63  ;;  %769 = vmatmul.f32.gmra.mxu0 %v520_v63 }
  0xb0   : > { %704 = vmatmul.f32.gmra.mxu3 %v521_v0  ;;  %834 = vmatmul.f32.gmra.mxu1 %v521_v0  ;;  %v1052_v0 = vld [vmem:[%s4329_s5 + $0x460] sm:$0xff] }
  0xb1   : > { %1228 = vmatpush.msrb.mxu3 %v1052_v0  ;;  %1165 = vmatpush.msrb.mxu2 %v926_v22  ;;  %v934_v0 = vld [vmem:[%s4329_s5 + $0xb0] sm:$0xff] }
  0xb2   : > { %v411_v2 = vpop.f32.mrf.mxu0  ;;  %v476_v3 = vpop.f32.mrf.mxu1 }
  0xb3   : > { %v412_v4 = vadd.f32 %v411_v2, %v3021_v47  ;;  %v477_v5 = vadd.f32 %v476_v3, %v3023_v48  ;;  %v1123_v2 = vld [vmem:[%s4329_s5 + $0x698] sm:$0xff] }
  0xb4   : > { %1348 = vmatpush.msra.mxu1 %v1123_v2  ;;  %v927_v2 = vld [vmem:[%s4329_s5 + $0x78] sm:$0xff] }
  0xb5   : > { %v522_v7 = vmax.f32 %v412_v4, 0.0  ;;  %v523_v8 = vmax.f32 %v477_v5, 0.0  ;;  %v1116_v5 = vld [vmem:[%s4329_s5 + $0x660] sm:$0xff] }
  0xb6   : > { %1349 = vmatpush.msra.mxu1 %v1116_v5 }
  0xb7   : > { %642 = vmatmul.f32.gmra.mxu2 %v522_v7  ;;  %772 = vmatmul.f32.gmra.mxu0 %v522_v7  ;;  %v1018_v7 = vld [vmem:[%s4329_s5 + $0x350] sm:$0xff] }
  0xb8   : > { %707 = vmatmul.f32.gmra.mxu3 %v523_v8  ;;  %837 = vmatmul.f32.gmra.mxu1 %v523_v8  ;;  %v1109_v8 = vld [vmem:[%s4329_s5 + $0x628] sm:$0xff] }
  0xb9   : > { %1282 = vmatpush.msra.mxu0 %v1018_v7  ;;  %1350 = vmatpush.msra.mxu1 %v1109_v8 }
  0xba   : > { %v414_v10 = vpop.f32.mrf.mxu0  ;;  %v479_v11 = vpop.f32.mrf.mxu1 }
  0xbb   : > { %v415_v12 = vadd.f32 %v414_v10, %v3021_v47  ;;  %v480_v13 = vadd.f32 %v479_v11, %v3023_v48  ;;  %1283 = vmatpush.msra.mxu0 %v1011_v14 }
  0xbd   : > { %v524_v15 = vmax.f32 %v415_v12, 0.0  ;;  %v525_v16 = vmax.f32 %v480_v13, 0.0  ;;  %v1045_v13 = vld [vmem:[%s4329_s5 + $0x428] sm:$0xff] }
  0xbe   : > { %1229 = vmatpush.msrb.mxu3 %v1045_v13  ;;  %v1012_v13 = vld [vmem:[%s4329_s5 + $0x320] sm:$0xff] }
  0xbf   : > { %645 = vmatmul.f32.gmra.mxu2 %v524_v15  ;;  %775 = vmatmul.f32.gmra.mxu0 %v524_v15  ;;  %v1102_v15 = vld [vmem:[%s4329_s5 + $0x5f0] sm:$0xff] }
  0xc0   : > { %710 = vmatmul.f32.gmra.mxu3 %v525_v16  ;;  %840 = vmatmul.f32.gmra.mxu1 %v525_v16  ;;  %v1004_v16 = vld [vmem:[%s4329_s5 + $0x2e0] sm:$0xff] }
  0xc1   : > { %1351 = vmatpush.msra.mxu1 %v1102_v15  ;;  %1284 = vmatpush.msra.mxu0 %v1004_v16 }
  0xc2   : > { %v417_v18 = vpop.f32.mrf.mxu0  ;;  %v482_v19 = vpop.f32.mrf.mxu1 }
  0xc3   : > { %v418_v20 = vadd.f32 %v417_v18, %v3021_v47  ;;  %v483_v21 = vadd.f32 %v482_v19, %v3023_v48  ;;  %v1095_v19 = vld [vmem:[%s4329_s5 + $0x5b8] sm:$0xff] }
  0xc4   : > { %1352 = vmatpush.msra.mxu1 %v1095_v19 }
  0xc5   : > { %v526_v23 = vmax.f32 %v418_v20, 0.0  ;;  %v527_v24 = vmax.f32 %v483_v21, 0.0  ;;  %v997_v20 = vld [vmem:[%s4329_s5 + $0x2a8] sm:$0xff]  ;;  %v1088_v21 = vld [vmem:[%s4329_s5 + $0x580] sm:$0xff] }
  0xc6   : > { %1285 = vmatpush.msra.mxu0 %v997_v20  ;;  %1353 = vmatpush.msra.mxu1 %v1088_v21  ;;  %v614_v21 = vld [vmem:[%s4328_s4] sm:$0x3] }
  0xc7   : > { %648 = vmatmul.f32.gmra.mxu2 %v526_v23  ;;  %778 = vmatmul.f32.gmra.mxu0 %v526_v23  ;;  %v990_v23 = vld [vmem:[%s4329_s5 + $0x270] sm:$0xff]  ;;  %v3252_v22 = vperm.slane %v614_v21, 1 }
  0xc8   : > { %713 = vmatmul.f32.gmra.mxu3 %v527_v24  ;;  %843 = vmatmul.f32.gmra.mxu1 %v527_v24 }
  0xc9   : > { %1286 = vmatpush.msra.mxu0 %v990_v23 }
  0xca   : > { %v420_v26 = vpop.f32.mrf.mxu0  ;;  %v485_v27 = vpop.f32.mrf.mxu1 }
  0xcb   : > { %v421_v28 = vadd.f32 %v420_v26, %v3021_v47  ;;  %v486_v29 = vadd.f32 %v485_v27, %v3023_v48  ;;  %v1081_v26 = vld [vmem:[%s4329_s5 + $0x548] sm:$0xff]  ;;  %1287 = vmatpush.msra.mxu0 %v983_v30 }
  0xcc   : > { %1354 = vmatpush.msra.mxu1 %v1081_v26 }
  0xcd   : > { %v528_v31 = vmax.f32 %v421_v28, 0.0  ;;  %v529_v32 = vmax.f32 %v486_v29, 0.0  ;;  %v1038_v29 = vld [vmem:[%s4329_s5 + $0x3f0] sm:$0xff] }
  0xce   : > { %1230 = vmatpush.msrb.mxu3 %v1038_v29  ;;  %1355 = vmatpush.msra.mxu1 %v1074_v33  ;;  %v998_v29 = vld [vmem:[%s4329_s5 + $0x2b0] sm:$0xff] }
  0xcf   : > { %651 = vmatmul.f32.gmra.mxu2 %v528_v31  ;;  %781 = vmatmul.f32.gmra.mxu0 %v528_v31  ;;  %v1110_v33 = vld [vmem:[%s4329_s5 + $0x630] sm:$0xff] }
  0xd0   : > { %716 = vmatmul.f32.gmra.mxu3 %v529_v32  ;;  %846 = vmatmul.f32.gmra.mxu1 %v529_v32 }
  0xd1   : > { %1231 = vmatpush.msrb.mxu3 %v1031_v38 }
  0xd2   : > { %v423_v34 = vpop.f32.mrf.mxu0  ;;  %v488_v35 = vpop.f32.mrf.mxu1 }
  0xd3   : > { %v424_v36 = vadd.f32 %v423_v34, %v3021_v47  ;;  %v489_v37 = vadd.f32 %v488_v35, %v3023_v48  ;;  %v976_v34 = vld [vmem:[%s4329_s5 + $0x200] sm:$0xff]  ;;  %v1067_v35 = vld [vmem:[%s4329_s5 + $0x4d8] sm:$0xff] }
  0xd4   : > { %1288 = vmatpush.msra.mxu0 %v976_v34  ;;  %1356 = vmatpush.msra.mxu1 %v1067_v35 }
  0xd5   : > { %v530_v39 = vmax.f32 %v424_v36, 0.0  ;;  %v531_v40 = vmax.f32 %v489_v37, 0.0  ;;  %v969_v36 = vld [vmem:[%s4329_s5 + $0x1c8] sm:$0xff]  ;;  %v919_v37 = vld [vmem:[%s4329_s5 + $0x38] sm:$0xff] }
  0xd6   : > { %1166 = vmatpush.msrb.mxu2 %v919_v37  ;;  %1289 = vmatpush.msra.mxu0 %v969_v36 }
  0xd7   : > { %654 = vmatmul.f32.gmra.mxu2 %v530_v39  ;;  %784 = vmatmul.f32.gmra.mxu0 %v530_v39 }
  0xd8   : > { %719 = vmatmul.f32.gmra.mxu3 %v531_v40  ;;  %849 = vmatmul.f32.gmra.mxu1 %v531_v40 }
  0xd9   : > { %1357 = vmatpush.msra.mxu1 %v1060_v41  ;;  %v991_v41 = vld [vmem:[%s4329_s5 + $0x278] sm:$0xff] }
  0xda   : > { %v426_v42 = vpop.f32.mrf.mxu0  ;;  %v491_v43 = vpop.f32.mrf.mxu1 }
  0xdb   : > { %v427_v44 = vadd.f32 %v426_v42, %v3021_v47  ;;  %v492_v45 = vadd.f32 %v491_v43, %v3023_v48  ;;  %v962_v42 = vld [vmem:[%s4329_s5 + $0x190] sm:$0xff] }
  0xdc   : > { %1290 = vmatpush.msra.mxu0 %v962_v42 }
  0xdd   : > { %v532_v49 = vmax.f32 %v427_v44, 0.0  ;;  %v533_v50 = vmax.f32 %v492_v45, 0.0 }
  0xdf   : > { %657 = vmatmul.f32.gmra.mxu2 %v532_v49  ;;  %787 = vmatmul.f32.gmra.mxu0 %v532_v49  ;;  %v1053_v49 = vld [vmem:[%s4329_s5 + $0x468] sm:$0xff] }
  0xe0   : > { %722 = vmatmul.f32.gmra.mxu3 %v533_v50  ;;  %852 = vmatmul.f32.gmra.mxu1 %v533_v50  ;;  %v955_v50 = vld [vmem:[%s4329_s5 + $0x158] sm:$0xff] }
  0xe1   : > { %1358 = vmatpush.msra.mxu1 %v1053_v49  ;;  %1291 = vmatpush.msra.mxu0 %v955_v50 }
  0xe2   : > { %v429_v52 = vpop.f32.mrf.mxu0  ;;  %v494_v53 = vpop.f32.mrf.mxu1 }
  0xe3   : > { %v430_v54 = vadd.f32 %v429_v52, %v3021_v47  ;;  %v495_v55 = vadd.f32 %v494_v53, %v3023_v48  ;;  %v948_v52 = vld [vmem:[%s4329_s5 + $0x120] sm:$0xff]  ;;  %1359 = vmatpush.msra.mxu1 %v1046_v51 }
  0xe4   : > { %v912_v53 = vld [vmem:[%s4329_s5] sm:$0xff]  ;;  %1292 = vmatpush.msra.mxu0 %v948_v52 }
  0xe5   : > { %v534_v57 = vmax.f32 %v430_v54, 0.0  ;;  %v535_v58 = vmax.f32 %v495_v55, 0.0  ;;  %v1024_v54 = vld [vmem:[%s4329_s5 + $0x380] sm:$0xff]  ;;  %1167 = vmatpush.msrb.mxu2 %v912_v53 }
  0xe6   : > { %1232 = vmatpush.msrb.mxu3 %v1024_v54 }
  0xe7   : > { %660 = vmatmul.f32.gmra.mxu2 %v534_v57  ;;  %790 = vmatmul.f32.gmra.mxu0 %v534_v57  ;;  %v1039_v57 = vld [vmem:[%s4329_s5 + $0x3f8] sm:$0xff] }
  0xe8   : > { %725 = vmatmul.f32.gmra.mxu3 %v535_v58  ;;  %855 = vmatmul.f32.gmra.mxu1 %v535_v58  ;;  %v941_v58 = vld [vmem:[%s4329_s5 + $0xe8] sm:$0xff] }
  0xe9   : > { %1360 = vmatpush.msra.mxu1 %v1039_v57  ;;  %1293 = vmatpush.msra.mxu0 %v941_v58 }
  0xea   : > { %v432_v60 = vpop.f32.mrf.mxu0  ;;  %v497_v61 = vpop.f32.mrf.mxu1 }
  0xeb   : > { %v433_v62 = vadd.f32 %v432_v60, %v3021_v47  ;;  %v498_v63 = vadd.f32 %v497_v61, %v3023_v48  ;;  %1294 = vmatpush.msra.mxu0 %v934_v0 }
  0xed   : > { %v536_v3 = vmax.f32 %v433_v62, 0.0  ;;  %v537_v4 = vmax.f32 %v498_v63, 0.0  ;;  %v1032_v63 = vld [vmem:[%s4329_s5 + $0x3c0] sm:$0xff]  ;;  %1295 = vmatpush.msra.mxu0 %v927_v2 }
  0xee   : > { %1361 = vmatpush.msra.mxu1 %v1032_v63 }
  0xef   : > { %663 = vmatmul.f32.gmra.mxu2 %v536_v3  ;;  %793 = vmatmul.f32.gmra.mxu0 %v536_v3  ;;  %v1019_v3 = vld [vmem:[%s4329_s5 + $0x358] sm:$0xff] }
  0xf0   : > { %728 = vmatmul.f32.gmra.mxu3 %v537_v4  ;;  %858 = vmatmul.f32.gmra.mxu1 %v537_v4 }
  0xf1   : > { %1412 = vmatpush.msra.mxu2 %v1019_v3  ;;  %1362 = vmatpush.msra.mxu1 %v1025_v1  ;;  %v977_v3 = vld [vmem:[%s4329_s5 + $0x208] sm:$0xff] }
  0xf2   : > { %v435_v9 = vpop.f32.mrf.mxu0  ;;  %v500_v10 = vpop.f32.mrf.mxu1  ;;  %1296 = vmatpush.msra.mxu0 %v920_v6 }
  0xf3   : > { %v436_v11 = vadd.f32 %v435_v9, %v3021_v47  ;;  %v501_v12 = vadd.f32 %v500_v10, %v3023_v48  ;;  %v1131_v9 = vld [vmem:[%s4329_s5 + $0x6d8] sm:$0xff]  ;;  %1413 = vmatpush.msra.mxu2 %v1012_v13 }
  0xf4   : > { %1477 = vmatpush.msra.mxu3 %v1131_v9 }
  0xf5   : > { %v538_v17 = vmax.f32 %v436_v11, 0.0  ;;  %v539_v18 = vmax.f32 %v501_v12, 0.0  ;;  %v913_v12 = vld [vmem:[%s4329_s5 + $0x8] sm:$0xff] }
  0xf6   : > { %1297 = vmatpush.msra.mxu0 %v913_v12 }
  0xf7   : > { %666 = vmatmul.f32.gmra.mxu2 %v538_v17  ;;  %796 = vmatmul.f32.gmra.mxu0 %v538_v17 }
  0xf8   : > { %731 = vmatmul.f32.gmra.mxu3 %v539_v18  ;;  %861 = vmatmul.f32.gmra.mxu1 %v539_v18  ;;  %v1124_v18 = vld [vmem:[%s4329_s5 + $0x6a0] sm:$0xff] }
  0xf9   : > { %1478 = vmatpush.msra.mxu3 %v1124_v18 }
  0xfa   : > { %v438_v24 = vpop.f32.mrf.mxu0  ;;  %v503_v25 = vpop.f32.mrf.mxu1 }
  0xfb   : > { %v439_v27 = vadd.f32 %v438_v24, %v3021_v47  ;;  %v504_v28 = vadd.f32 %v503_v25, %v3023_v48 }
  0xfd   : > { %v540_v31 = vmax.f32 %v439_v27, 0.0  ;;  %v541_v32 = vmax.f32 %v504_v28, 0.0  ;;  %v3261_v27 = vperm.slane %v614_v21, 0 }
  0xff   : > { %669 = vmatmul.f32.gmra.mxu2 %v540_v31  ;;  %799 = vmatmul.f32.gmra.mxu0 %v540_v31 }
 0x100   : > { %734 = vmatmul.f32.gmra.mxu3 %v541_v32  ;;  %864 = vmatmul.f32.gmra.mxu1 %v541_v32 }
 0x102   : > { %v441_v39 = vpop.f32.mrf.mxu0  ;;  %v506_v40 = vpop.f32.mrf.mxu1 }
 0x103   : > { %v442_v43 = vadd.f32 %v441_v39, %v3021_v47  ;;  %v507_v44 = vadd.f32 %v506_v40, %v3023_v48 }
 0x105   : > { %v542_v45 = vmax.f32 %v442_v43, 0.0  ;;  %v543_v46 = vmax.f32 %v507_v44, 0.0 }
 0x107   : > { %672 = vmatmul.f32.gmra.mxu2 %v542_v45  ;;  %802 = vmatmul.f32.gmra.mxu0 %v542_v45  ;;  %v1103_v45 = vld [vmem:[%s4329_s5 + $0x5f8] sm:$0xff] }
 0x108   : > { %737 = vmatmul.f32.gmra.mxu3 %v543_v46  ;;  %867 = vmatmul.f32.gmra.mxu1 %v543_v46 }
 0x10a   : > { %v444_v55 = vpop.f32.mrf.mxu0  ;;  %v509_v56 = vpop.f32.mrf.mxu1 }
 0x10b   : > { %v445_v59 = vadd.f32 %v444_v55, %v3021_v47  ;;  %v510_v60 = vadd.f32 %v509_v56, %v3023_v48  ;;  %v984_v55 = vld [vmem:[%s4329_s5 + $0x240] sm:$0xff] }
 0x10d   : > { %v544_v61 = vmax.f32 %v445_v59, 0.0  ;;  %v545_v62 = vmax.f32 %v510_v60, 0.0  ;;  %v1096_v59 = vld [vmem:[%s4329_s5 + $0x5c0] sm:$0xff] }
 0x10f   : > { %675 = vmatmul.f32.gmra.mxu2 %v544_v61  ;;  %805 = vmatmul.f32.gmra.mxu0 %v544_v61 }
 0x110   : > { %740 = vmatmul.f32.gmra.mxu3 %v545_v62  ;;  %870 = vmatmul.f32.gmra.mxu1 %v545_v62 }
 0x112   : > { %v447_v4 = vpop.f32.mrf.mxu0  ;;  %v512_v5 = vpop.f32.mrf.mxu1 }
 0x113   : > { %v448_v7 = vadd.f32 %v447_v4, %v3021_v47  ;;  %v513_v8 = vadd.f32 %v512_v5, %v3023_v48 }
 0x115   : > { %v546_v10 = vmax.f32 %v448_v7, 0.0  ;;  %v547_v11 = vmax.f32 %v513_v8, 0.0  ;;  %v1089_v7 = vld [vmem:[%s4329_s5 + $0x588] sm:$0xff] }
 0x117   : > { %678 = vmatmul.f32.gmra.mxu2 %v546_v10  ;;  %808 = vmatmul.f32.gmra.mxu0 %v546_v10 }
 0x118   : > { %743 = vmatmul.f32.gmra.mxu3 %v547_v11  ;;  %873 = vmatmul.f32.gmra.mxu1 %v547_v11 }
 0x11a   : > { %v450_v14 = vpop.f32.mrf.mxu0  ;;  %v515_v15 = vpop.f32.mrf.mxu1 }
 0x11b   : > { %v451_v16 = vadd.f32 %v450_v14, %v3021_v47  ;;  %v516_v17 = vadd.f32 %v515_v15, %v3023_v48  ;;  %v1005_v47 = vld [vmem:[%s4329_s5 + $0x2e8] sm:$0xff]  ;;  %v970_v15 = vld [vmem:[%s4329_s5 + $0x1d0] sm:$0xff] }
 0x11c   : > { %1414 = vmatpush.msra.mxu2 %v1005_v47  ;;  %v1117_v48 = vld [vmem:[%s4329_s5 + $0x668] sm:$0xff] }
 0x11d   : > { %v548_v19 = vmax.f32 %v451_v16, 0.0  ;;  %v549_v20 = vmax.f32 %v516_v17, 0.0  ;;  %1479 = vmatpush.msra.mxu3 %v1117_v48 }
 0x11e   : > { %1415 = vmatpush.msra.mxu2 %v998_v29 }
 0x11f   : > { %681 = vmatmul.f32.gmra.mxu2 %v548_v19  ;;  %811 = vmatmul.f32.gmra.mxu0 %v548_v19  ;;  %v1082_v19 = vld [vmem:[%s4329_s5 + $0x550] sm:$0xff] }
 0x120   : > { %746 = vmatmul.f32.gmra.mxu3 %v549_v20  ;;  %876 = vmatmul.f32.gmra.mxu1 %v549_v20 }
 0x121   : > { %1480 = vmatpush.msra.mxu3 %v1110_v33  ;;  %1416 = vmatpush.msra.mxu2 %v991_v41 }
 0x123   : > { %1481 = vmatpush.msra.mxu3 %v1103_v45  ;;  %1417 = vmatpush.msra.mxu2 %v984_v55 }
 0x124   : > { %v767_v23 = vpop.f32.mrf.mxu0 }
 0x125   : > { %v768_v24 = vadd.f32 %v767_v23, %v3252_v22  ;;  %v832_v25 = vpop.f32.mrf.mxu1  ;;  %1482 = vmatpush.msra.mxu3 %v1096_v59  ;;  %1418 = vmatpush.msra.mxu2 %v977_v3 }
 0x127   : > { %v833_v26 = vadd.f32 %v832_v25, %v768_v24  ;;  %1483 = vmatpush.msra.mxu3 %v1089_v7  ;;  %1419 = vmatpush.msra.mxu2 %v970_v15  ;;  %v1132_v15 = vld [vmem:[%s4329_s5 + $0x6e0] sm:$0xff] }
 0x128   : > { %1607 = vmatpush.msrb.mxu1 %v1132_v15 }
 0x129   : > { %v3263_v28 = vmax.f32 %v833_v26, 0.0  ;;  %1484 = vmatpush.msra.mxu3 %v1082_v19  ;;  %v963_v26 = vld [vmem:[%s4329_s5 + $0x198] sm:$0xff] }
 0x12a   : > { %v637_v30 = vpop.f32.mrf.mxu2  ;;  %1420 = vmatpush.msra.mxu2 %v963_v26  ;;  %v935_v26 = vld [vmem:[%s4329_s5 + $0xb8] sm:$0xff] }
 0x12b   : > { %v638_v31 = vadd.f32 %v637_v30, %v3261_v27  ;;  %1233 = vmatmul.f32.vlgmr.msrb.gmra.mxu3 %v3263_v28  ;;  %1363 = vmatmul.f32.vlgmr.msra.gmra.mxu1 %v3263_v28  ;;  %v702_v32 = vpop.f32.mrf.mxu3 }
 0x12c   : > { %v770_v34 = vpop.f32.mrf.mxu0 }
 0x12d   : > { %v703_v35 = vadd.f32 %v702_v32, %v638_v31  ;;  %v771_v36 = vadd.f32 %v770_v34, %v3252_v22  ;;  %v835_v37 = vpop.f32.mrf.mxu1  ;;  %v1075_v32 = vld [vmem:[%s4329_s5 + $0x518] sm:$0xff] }
 0x12e   : > { %1485 = vmatpush.msra.mxu3 %v1075_v32 }
 0x12f   : > { %v3275_v38 = vmax.f32 %v703_v35, 0.0  ;;  %v836_v39 = vadd.f32 %v835_v37, %v771_v36 }
 0x131   : > { %v3277_v40 = vmax.f32 %v836_v39, 0.0  ;;  %1168 = vmatmul.f32.vlgmr.msrb.gmra.mxu2 %v3275_v38  ;;  %1298 = vmatmul.f32.vlgmr.msra.gmra.mxu0 %v3275_v38 }
 0x132   : > { %v640_v42 = vpop.f32.mrf.mxu2 }
 0x133   : > { %v641_v43 = vadd.f32 %v640_v42, %v3261_v27  ;;  %1236 = vmatmul.f32.gmra.mxu3 %v3277_v40  ;;  %1366 = vmatmul.f32.gmra.mxu1 %v3277_v40  ;;  %v705_v44 = vpop.f32.mrf.mxu3  ;;  %v956_v42 = vld [vmem:[%s4329_s5 + $0x160] sm:$0xff] }
 0x134   : > { %v773_v46 = vpop.f32.mrf.mxu0  ;;  %1421 = vmatpush.msra.mxu2 %v956_v42 }
 0x135   : > { %v706_v49 = vadd.f32 %v705_v44, %v641_v43  ;;  %v774_v50 = vadd.f32 %v773_v46, %v3252_v22  ;;  %v838_v51 = vpop.f32.mrf.mxu1  ;;  %v1068_v46 = vld [vmem:[%s4329_s5 + $0x4e0] sm:$0xff] }
 0x136   : > { %1486 = vmatpush.msra.mxu3 %v1068_v46  ;;  %v1097_v46 = vld [vmem:[%s4329_s5 + $0x5c8] sm:$0xff] }
 0x137   : > { %v3291_v52 = vmax.f32 %v706_v49, 0.0  ;;  %v839_v53 = vadd.f32 %v838_v51, %v774_v50 }
 0x139   : > { %v3293_v54 = vmax.f32 %v839_v53, 0.0  ;;  %1171 = vmatmul.f32.gmra.mxu2 %v3291_v52  ;;  %1301 = vmatmul.f32.gmra.mxu0 %v3291_v52 }
 0x13a   : > { %v643_v56 = vpop.f32.mrf.mxu2 }
 0x13b   : > { %v644_v57 = vadd.f32 %v643_v56, %v3261_v27  ;;  %1239 = vmatmul.f32.gmra.mxu3 %v3293_v54  ;;  %1369 = vmatmul.f32.gmra.mxu1 %v3293_v54  ;;  %v708_v58 = vpop.f32.mrf.mxu3 }
 0x13c   : > { %v776_v60 = vpop.f32.mrf.mxu0 }
 0x13d   : > { %v709_v61 = vadd.f32 %v708_v58, %v644_v57  ;;  %v777_v62 = vadd.f32 %v776_v60, %v3252_v22  ;;  %v841_v63 = vpop.f32.mrf.mxu1  ;;  %v949_v58 = vld [vmem:[%s4329_s5 + $0x128] sm:$0xff] }
 0x13e   : > { %1422 = vmatpush.msra.mxu2 %v949_v58  ;;  %v928_v58 = vld [vmem:[%s4329_s5 + $0x80] sm:$0xff] }
 0x13f   : > { %v3307_v0 = vmax.f32 %v709_v61, 0.0  ;;  %v842_v1 = vadd.f32 %v841_v63, %v777_v62  ;;  %v1061_v62 = vld [vmem:[%s4329_s5 + $0x4a8] sm:$0xff] }
 0x140   : > { %1487 = vmatpush.msra.mxu3 %v1061_v62 }
 0x141   : > { %v3309_v2 = vmax.f32 %v842_v1, 0.0  ;;  %1174 = vmatmul.f32.gmra.mxu2 %v3307_v0  ;;  %1304 = vmatmul.f32.gmra.mxu0 %v3307_v0 }
 0x142   : > { %v646_v4 = vpop.f32.mrf.mxu2 }
 0x143   : > { %v647_v5 = vadd.f32 %v646_v4, %v3261_v27  ;;  %1242 = vmatmul.f32.gmra.mxu3 %v3309_v2  ;;  %1372 = vmatmul.f32.gmra.mxu1 %v3309_v2  ;;  %v711_v6 = vpop.f32.mrf.mxu3 }
 0x144   : > { %v779_v8 = vpop.f32.mrf.mxu0 }
 0x145   : > { %v712_v9 = vadd.f32 %v711_v6, %v647_v5  ;;  %v780_v10 = vadd.f32 %v779_v8, %v3252_v22  ;;  %v844_v11 = vpop.f32.mrf.mxu1  ;;  %v942_v8 = vld [vmem:[%s4329_s5 + $0xf0] sm:$0xff] }
 0x146   : > { %1423 = vmatpush.msra.mxu2 %v942_v8 }
 0x147   : > { %v3323_v12 = vmax.f32 %v712_v9, 0.0  ;;  %v845_v13 = vadd.f32 %v844_v11, %v780_v10 }
 0x148   : > { %1424 = vmatpush.msra.mxu2 %v935_v26 }
 0x149   : > { %v3325_v14 = vmax.f32 %v845_v13, 0.0  ;;  %1177 = vmatmul.f32.gmra.mxu2 %v3323_v12  ;;  %1307 = vmatmul.f32.gmra.mxu0 %v3323_v12  ;;  %v1054_v13 = vld [vmem:[%s4329_s5 + $0x470] sm:$0xff] }
 0x14a   : > { %v649_v16 = vpop.f32.mrf.mxu2  ;;  %1488 = vmatpush.msra.mxu3 %v1054_v13  ;;  %1425 = vmatpush.msra.mxu2 %v928_v58  ;;  %v914_v58 = vld [vmem:[%s4329_s5 + $0x10] sm:$0xff] }
 0x14b   : > { %v650_v17 = vadd.f32 %v649_v16, %v3261_v27  ;;  %1245 = vmatmul.f32.gmra.mxu3 %v3325_v14  ;;  %1375 = vmatmul.f32.gmra.mxu1 %v3325_v14  ;;  %v714_v18 = vpop.f32.mrf.mxu3 }
 0x14c   : > { %v782_v20 = vpop.f32.mrf.mxu0 }
 0x14d   : > { %v715_v21 = vadd.f32 %v714_v18, %v650_v17  ;;  %v783_v47 = vadd.f32 %v782_v20, %v3252_v22  ;;  %v847_v48 = vpop.f32.mrf.mxu1  ;;  %v1125_v20 = vld [vmem:[%s4329_s5 + $0x6a8] sm:$0xff] }
 0x14e   : > { %1608 = vmatpush.msrb.mxu1 %v1125_v20  ;;  %v921_v20 = vld [vmem:[%s4329_s5 + $0x48] sm:$0xff] }
 0x14f   : > { %v3339_v23 = vmax.f32 %v715_v21, 0.0  ;;  %v848_v24 = vadd.f32 %v847_v48, %v783_v47  ;;  %v1118_v48 = vld [vmem:[%s4329_s5 + $0x670] sm:$0xff]  ;;  %1426 = vmatpush.msra.mxu2 %v921_v20 }
 0x150   : > { %1609 = vmatpush.msrb.mxu1 %v1118_v48  ;;  %v964_v48 = vld [vmem:[%s4329_s5 + $0x1a0] sm:$0xff] }
 0x151   : > { %v3341_v25 = vmax.f32 %v848_v24, 0.0  ;;  %1180 = vmatmul.f32.gmra.mxu2 %v3339_v23  ;;  %1310 = vmatmul.f32.gmra.mxu0 %v3339_v23 }
 0x152   : > { %v652_v29 = vpop.f32.mrf.mxu2  ;;  %1427 = vmatpush.msra.mxu2 %v914_v58 }
 0x153   : > { %v653_v30 = vadd.f32 %v652_v29, %v3261_v27  ;;  %1248 = vmatmul.f32.gmra.mxu3 %v3341_v25  ;;  %1378 = vmatmul.f32.gmra.mxu1 %v3341_v25  ;;  %v717_v31 = vpop.f32.mrf.mxu3  ;;  %v1020_v29 = vld [vmem:[%s4329_s5 + $0x360] sm:$0xff] }
 0x154   : > { %v785_v33 = vpop.f32.mrf.mxu0  ;;  %1542 = vmatpush.msrb.mxu0 %v1020_v29 }
 0x155   : > { %v718_v34 = vadd.f32 %v717_v31, %v653_v30  ;;  %v786_v35 = vadd.f32 %v785_v33, %v3252_v22  ;;  %v850_v36 = vpop.f32.mrf.mxu1  ;;  %v1111_v30 = vld [vmem:[%s4329_s5 + $0x638] sm:$0xff] }
 0x156   : > { %1610 = vmatpush.msrb.mxu1 %v1111_v30  ;;  %v1055_v30 = vld [vmem:[%s4329_s5 + $0x478] sm:$0xff] }
 0x157   : > { %v3355_v37 = vmax.f32 %v718_v34, 0.0  ;;  %v851_v39 = vadd.f32 %v850_v36, %v786_v35  ;;  %v1047_v34 = vld [vmem:[%s4329_s5 + $0x438] sm:$0xff]  ;;  %v1013_v35 = vld [vmem:[%s4329_s5 + $0x328] sm:$0xff]  ;;  %v1104_v36 = vld [vmem:[%s4329_s5 + $0x600] sm:$0xff] }
 0x158   : > { %1489 = vmatpush.msra.mxu3 %v1047_v34  ;;  %1543 = vmatpush.msrb.mxu0 %v1013_v35 }
 0x159   : > { %v3357_v41 = vmax.f32 %v851_v39, 0.0  ;;  %1183 = vmatmul.f32.gmra.mxu2 %v3355_v37  ;;  %1313 = vmatmul.f32.gmra.mxu0 %v3355_v37 }
 0x15a   : > { %v655_v43 = vpop.f32.mrf.mxu2  ;;  %1611 = vmatpush.msrb.mxu1 %v1104_v36 }
 0x15b   : > { %v656_v44 = vadd.f32 %v655_v43, %v3261_v27  ;;  %1251 = vmatmul.f32.gmra.mxu3 %v3357_v41  ;;  %1381 = vmatmul.f32.gmra.mxu1 %v3357_v41  ;;  %v720_v45 = vpop.f32.mrf.mxu3 }
 0x15c   : > { %v788_v49 = vpop.f32.mrf.mxu0  ;;  %1612 = vmatpush.msrb.mxu1 %v1097_v46 }
 0x15d   : > { %v721_v50 = vadd.f32 %v720_v45, %v656_v44  ;;  %v789_v51 = vadd.f32 %v788_v49, %v3252_v22  ;;  %v853_v53 = vpop.f32.mrf.mxu1  ;;  %v1006_v45 = vld [vmem:[%s4329_s5 + $0x2f0] sm:$0xff] }
 0x15e   : > { %1544 = vmatpush.msrb.mxu0 %v1006_v45  ;;  %v1041_v45 = vld [vmem:[%s4329_s5 + $0x408] sm:$0xff] }
 0x15f   : > { %v3371_v55 = vmax.f32 %v721_v50, 0.0  ;;  %v854_v56 = vadd.f32 %v853_v53, %v789_v51  ;;  %v999_v51 = vld [vmem:[%s4329_s5 + $0x2b8] sm:$0xff]  ;;  %v1090_v53 = vld [vmem:[%s4329_s5 + $0x590] sm:$0xff] }
 0x160   : > { %1545 = vmatpush.msrb.mxu0 %v999_v51  ;;  %1613 = vmatpush.msrb.mxu1 %v1090_v53  ;;  %v1034_v51 = vld [vmem:[%s4329_s5 + $0x3d0] sm:$0xff] }
 0x161   : > { %v3373_v57 = vmax.f32 %v854_v56, 0.0  ;;  %1186 = vmatmul.f32.gmra.mxu2 %v3371_v55  ;;  %1316 = vmatmul.f32.gmra.mxu0 %v3371_v55 }
 0x162   : > { %v658_v59 = vpop.f32.mrf.mxu2 }
 0x163   : > { %v659_v60 = vadd.f32 %v658_v59, %v3261_v27  ;;  %1254 = vmatmul.f32.gmra.mxu3 %v3373_v57  ;;  %1384 = vmatmul.f32.gmra.mxu1 %v3373_v57  ;;  %v723_v61 = vpop.f32.mrf.mxu3  ;;  %v992_v59 = vld [vmem:[%s4329_s5 + $0x280] sm:$0xff] }
 0x164   : > { %v791_v63 = vpop.f32.mrf.mxu0  ;;  %1546 = vmatpush.msrb.mxu0 %v992_v59  ;;  %v1026_v59 = vld [vmem:[%s4329_s5 + $0x390] sm:$0xff] }
 0x165   : > { %v724_v1 = vadd.f32 %v723_v61, %v659_v60  ;;  %v792_v3 = vadd.f32 %v791_v63, %v3252_v22  ;;  %v856_v4 = vpop.f32.mrf.mxu1  ;;  %v1083_v61 = vld [vmem:[%s4329_s5 + $0x558] sm:$0xff] }
 0x166   : > { %1614 = vmatpush.msrb.mxu1 %v1083_v61 }
 0x167   : > { %v3387_v5 = vmax.f32 %v724_v1, 0.0  ;;  %v857_v6 = vadd.f32 %v856_v4, %v792_v3  ;;  %v1040_v1 = vld [vmem:[%s4329_s5 + $0x400] sm:$0xff]  ;;  %v985_v3 = vld [vmem:[%s4329_s5 + $0x248] sm:$0xff] }
 0x168   : > { %1490 = vmatpush.msra.mxu3 %v1040_v1  ;;  %1547 = vmatpush.msrb.mxu0 %v985_v3 }
 0x169   : > { %v3389_v7 = vmax.f32 %v857_v6, 0.0  ;;  %1189 = vmatmul.f32.gmra.mxu2 %v3387_v5  ;;  %1319 = vmatmul.f32.gmra.mxu0 %v3387_v5  ;;  %v1076_v6 = vld [vmem:[%s4329_s5 + $0x520] sm:$0xff] }
 0x16a   : > { %v661_v9 = vpop.f32.mrf.mxu2  ;;  %1615 = vmatpush.msrb.mxu1 %v1076_v6 }
 0x16b   : > { %v662_v10 = vadd.f32 %v661_v9, %v3261_v27  ;;  %1257 = vmatmul.f32.gmra.mxu3 %v3389_v7  ;;  %1387 = vmatmul.f32.gmra.mxu1 %v3389_v7  ;;  %v726_v11 = vpop.f32.mrf.mxu3 }
 0x16c   : > { %v794_v16 = vpop.f32.mrf.mxu0 }
 0x16d   : > { %v727_v17 = vadd.f32 %v726_v11, %v662_v10  ;;  %v795_v18 = vadd.f32 %v794_v16, %v3252_v22  ;;  %v859_v19 = vpop.f32.mrf.mxu1  ;;  %v978_v11 = vld [vmem:[%s4329_s5 + $0x210] sm:$0xff]  ;;  %v1069_v16 = vld [vmem:[%s4329_s5 + $0x4e8] sm:$0xff] }
 0x16e   : > { %1548 = vmatpush.msrb.mxu0 %v978_v11  ;;  %1616 = vmatpush.msrb.mxu1 %v1069_v16  ;;  %v922_v11 = vld [vmem:[%s4329_s5 + $0x50] sm:$0xff]  ;;  %v915_v16 = vld [vmem:[%s4329_s5 + $0x18] sm:$0xff] }
 0x16f   : > { %v3409_v21 = vmax.f32 %v727_v17, 0.0  ;;  %v860_v47 = vadd.f32 %v859_v19, %v795_v18  ;;  %v971_v17 = vld [vmem:[%s4329_s5 + $0x1d8] sm:$0xff]  ;;  %v1062_v19 = vld [vmem:[%s4329_s5 + $0x4b0] sm:$0xff] }
 0x170   : > { %1549 = vmatpush.msrb.mxu0 %v971_v17  ;;  %1617 = vmatpush.msrb.mxu1 %v1062_v19 }
 0x171   : > { %v3414_v24 = vmax.f32 %v860_v47, 0.0  ;;  %1192 = vmatmul.f32.gmra.mxu2 %v3409_v21  ;;  %1322 = vmatmul.f32.gmra.mxu0 %v3409_v21 }
 0x172   : > { %v664_v31 = vpop.f32.mrf.mxu2  ;;  %1550 = vmatpush.msrb.mxu0 %v964_v48  ;;  %1618 = vmatpush.msrb.mxu1 %v1055_v30 }
 0x173   : > { %v665_v32 = vadd.f32 %v664_v31, %v3261_v27  ;;  %1260 = vmatmul.f32.gmra.mxu3 %v3414_v24  ;;  %1390 = vmatmul.f32.gmra.mxu1 %v3414_v24  ;;  %v729_v33 = vpop.f32.mrf.mxu3  ;;  %v1033_v31 = vld [vmem:[%s4329_s5 + $0x3c8] sm:$0xff] }
 0x174   : > { %v797_v39 = vpop.f32.mrf.mxu0  ;;  %1491 = vmatpush.msra.mxu3 %v1033_v31 }
 0x175   : > { %v730_v42 = vadd.f32 %v729_v33, %v665_v32  ;;  %v798_v43 = vadd.f32 %v797_v39, %v3252_v22  ;;  %v862_v44 = vpop.f32.mrf.mxu1  ;;  %v957_v33 = vld [vmem:[%s4329_s5 + $0x168] sm:$0xff]  ;;  %v1048_v39 = vld [vmem:[%s4329_s5 + $0x440] sm:$0xff] }
 0x176   : > { %1551 = vmatpush.msrb.mxu0 %v957_v33  ;;  %1619 = vmatpush.msrb.mxu1 %v1048_v39 }
 0x177   : > { %v3446_v49 = vmax.f32 %v730_v42, 0.0  ;;  %v863_v50 = vadd.f32 %v862_v44, %v798_v43  ;;  %v950_v44 = vld [vmem:[%s4329_s5 + $0x130] sm:$0xff]  ;;  %1492 = vmatpush.msra.mxu3 %v1026_v59 }
 0x178   : > { %1552 = vmatpush.msrb.mxu0 %v950_v44  ;;  %1620 = vmatpush.msrb.mxu1 %v1041_v45 }
 0x179   : > { %v3454_v56 = vmax.f32 %v863_v50, 0.0  ;;  %1195 = vmatmul.f32.gmra.mxu2 %v3446_v49  ;;  %1325 = vmatmul.f32.gmra.mxu0 %v3446_v49  ;;  %v943_v50 = vld [vmem:[%s4329_s5 + $0xf8] sm:$0xff] }
 0x17a   : > { %v667_v60 = vpop.f32.mrf.mxu2  ;;  %1553 = vmatpush.msrb.mxu0 %v943_v50  ;;  %1621 = vmatpush.msrb.mxu1 %v1034_v51 }
 0x17b   : > { %v668_v62 = vadd.f32 %v667_v60, %v3261_v27  ;;  %1263 = vmatmul.f32.gmra.mxu3 %v3454_v56  ;;  %1393 = vmatmul.f32.gmra.mxu1 %v3454_v56  ;;  %v732_v63 = vpop.f32.mrf.mxu3 }
 0x17c   : > { %v800_v4 = vpop.f32.mrf.mxu0 }
 0x17d   : > { %v733_v8 = vadd.f32 %v732_v63, %v668_v62  ;;  %v801_v9 = vadd.f32 %v800_v4, %v3252_v22  ;;  %v865_v10 = vpop.f32.mrf.mxu1  ;;  %v936_v62 = vld [vmem:[%s4329_s5 + $0xc0] sm:$0xff]  ;;  %v1027_v63 = vld [vmem:[%s4329_s5 + $0x398] sm:$0xff] }
 0x17e   : > { %1554 = vmatpush.msrb.mxu0 %v936_v62  ;;  %1622 = vmatpush.msrb.mxu1 %v1027_v63 }
 0x17f   : > { %v3483_v13 = vmax.f32 %v733_v8, 0.0  ;;  %v866_v15 = vadd.f32 %v865_v10, %v801_v9  ;;  %v929_v8 = vld [vmem:[%s4329_s5 + $0x88] sm:$0xff] }
 0x180   : > { %1555 = vmatpush.msrb.mxu0 %v929_v8 }
 0x181   : > { %v3491_v18 = vmax.f32 %v866_v15, 0.0  ;;  %1198 = vmatmul.f32.gmra.mxu2 %v3483_v13  ;;  %1328 = vmatmul.f32.gmra.mxu0 %v3483_v13 }
 0x182   : > { %v670_v47 = vpop.f32.mrf.mxu2  ;;  %1556 = vmatpush.msrb.mxu0 %v922_v11 }
 0x183   : > { %v671_v26 = vadd.f32 %v670_v47, %v3261_v27  ;;  %1266 = vmatmul.f32.gmra.mxu3 %v3491_v18  ;;  %1396 = vmatmul.f32.gmra.mxu1 %v3491_v18  ;;  %v735_v29 = vpop.f32.mrf.mxu3 }
 0x184   : > { %v803_v32 = vpop.f32.mrf.mxu0  ;;  %1557 = vmatpush.msrb.mxu0 %v915_v16 }
 0x185   : > { %v736_v34 = vadd.f32 %v735_v29, %v671_v26  ;;  %v804_v35 = vadd.f32 %v803_v32, %v3252_v22  ;;  %v868_v36 = vpop.f32.mrf.mxu1 }
 0x187   : > { %v3520_v42 = vmax.f32 %v736_v34, 0.0  ;;  %v869_v43 = vadd.f32 %v868_v36, %v804_v35  ;;  %v1021_v34 = vld [vmem:[%s4329_s5 + $0x368] sm:$0xff] }
 0x188   : > { %v1133_v35 = vld [vmem:[%s4329_s5 + $0x6e8] sm:$0xff]  ;;  %1672 = vmatpush.msrb.mxu2 %v1021_v34 }
 0x189   : > { %v3528_v46 = vmax.f32 %v869_v43, 0.0  ;;  %1201 = vmatmul.f32.gmra.mxu2 %v3520_v42  ;;  %1331 = vmatmul.f32.gmra.mxu0 %v3520_v42 }
 0x18a   : > { %v673_v53 = vpop.f32.mrf.mxu2  ;;  %1737 = vmatpush.msrb.mxu3 %v1133_v35 }
 0x18b   : > { %v674_v60 = vadd.f32 %v673_v53, %v3261_v27  ;;  %1269 = vmatmul.f32.gmra.mxu3 %v3528_v46  ;;  %1399 = vmatmul.f32.gmra.mxu1 %v3528_v46  ;;  %v738_v61 = vpop.f32.mrf.mxu3 }
 0x18c   : > { %v806_v1 = vpop.f32.mrf.mxu0 }
 0x18d   : > { %v739_v3 = vadd.f32 %v738_v61, %v674_v60  ;;  %v807_v4 = vadd.f32 %v806_v1, %v3252_v22  ;;  %v871_v6 = vpop.f32.mrf.mxu1  ;;  %v1014_v60 = vld [vmem:[%s4329_s5 + $0x330] sm:$0xff] }
 0x18e   : > { %v1126_v61 = vld [vmem:[%s4329_s5 + $0x6b0] sm:$0xff]  ;;  %1673 = vmatpush.msrb.mxu2 %v1014_v60 }
 0x18f   : > { %v3557_v9 = vmax.f32 %v739_v3, 0.0  ;;  %v872_v10 = vadd.f32 %v871_v6, %v807_v4  ;;  %1738 = vmatpush.msrb.mxu3 %v1126_v61  ;;  %v3609_v4 = vld [vmem:[%s4330_s6] sm:$0x7f]  ;;  %v1119_v6 = vld [vmem:[%s4329_s5 + $0x678] sm:$0xff] }
 0x190   : > { %v3622_v8 = vperm.slane %v3609_v4, 1 }
 0x191   : > { %v3562_v15 = vmax.f32 %v872_v10, 0.0  ;;  %1204 = vmatmul.f32.gmra.mxu2 %v3557_v9  ;;  %1334 = vmatmul.f32.gmra.mxu0 %v3557_v9 }
 0x192   : > { %v676_v17 = vpop.f32.mrf.mxu2  ;;  %1739 = vmatpush.msrb.mxu3 %v1119_v6  ;;  %v986_v6 = vld [vmem:[%s4329_s5 + $0x250] sm:$0xff] }
 0x193   : > { %v677_v19 = vadd.f32 %v676_v17, %v3261_v27  ;;  %1272 = vmatmul.f32.gmra.mxu3 %v3562_v15  ;;  %1402 = vmatmul.f32.gmra.mxu1 %v3562_v15  ;;  %v741_v20 = vpop.f32.mrf.mxu3 }
 0x194   : > { %v809_v47 = vpop.f32.mrf.mxu0 }
 0x195   : > { %v742_v48 = vadd.f32 %v741_v20, %v677_v19  ;;  %v810_v26 = vadd.f32 %v809_v47, %v3252_v22  ;;  %v874_v29 = vpop.f32.mrf.mxu1  ;;  %v3628_v20 = vperm.slane %v3609_v4, 0  ;;  %v1000_v47 = vld [vmem:[%s4329_s5 + $0x2c0] sm:$0xff] }
 0x197   : > { %v3573_v30 = vmax.f32 %v742_v48, 0.0  ;;  %v875_v31 = vadd.f32 %v874_v29, %v810_v26  ;;  %v1112_v48 = vld [vmem:[%s4329_s5 + $0x640] sm:$0xff] }
 0x198   : > { %1740 = vmatpush.msrb.mxu3 %v1112_v48 }
 0x199   : > { %v3575_v32 = vmax.f32 %v875_v31, 0.0  ;;  %1207 = vmatmul.f32.gmra.mxu2 %v3573_v30  ;;  %1337 = vmatmul.f32.gmra.mxu0 %v3573_v30 }
 0x19a   : > { %v679_v33 = vpop.f32.mrf.mxu2 }
 0x19b   : > { %v680_v36 = vadd.f32 %v679_v33, %v3261_v27  ;;  %1275 = vmatmul.f32.gmra.mxu3 %v3575_v32  ;;  %1405 = vmatmul.f32.gmra.mxu1 %v3575_v32  ;;  %v744_v39 = vpop.f32.mrf.mxu3 }
 0x19c   : > { %v812_v43 = vpop.f32.mrf.mxu0 }
 0x19d   : > { %v745_v44 = vadd.f32 %v744_v39, %v680_v36  ;;  %v813_v45 = vadd.f32 %v812_v43, %v3252_v22  ;;  %v877_v50 = vpop.f32.mrf.mxu1 }
 0x19f   : > { %v3589_v51 = vmax.f32 %v745_v44, 0.0  ;;  %v878_v53 = vadd.f32 %v877_v50, %v813_v45  ;;  %v993_v44 = vld [vmem:[%s4329_s5 + $0x288] sm:$0xff] }
 0x1a0   : > { %v1105_v45 = vld [vmem:[%s4329_s5 + $0x608] sm:$0xff] }
 0x1a1   : > { %v3591_v58 = vmax.f32 %v878_v53, 0.0  ;;  %1210 = vmatmul.f32.gmra.mxu2 %v3589_v51  ;;  %1340 = vmatmul.f32.gmra.mxu0 %v3589_v51 }
 0x1a2   : > { %v682_v59 = vpop.f32.mrf.mxu2  ;;  %1741 = vmatpush.msrb.mxu3 %v1105_v45 }
 0x1a3   : > { %v683_v22 = vadd.f32 %v682_v59, %v3261_v27  ;;  %1278 = vmatmul.f32.gmra.mxu3 %v3591_v58  ;;  %1408 = vmatmul.f32.gmra.mxu1 %v3591_v58  ;;  %v747_v62 = vpop.f32.mrf.mxu3  ;;  %v1007_v27 = vld [vmem:[%s4329_s5 + $0x2f8] sm:$0xff] }
 0x1a4   : > { %1674 = vmatpush.msrb.mxu2 %v1007_v27 }
 0x1a5   : > { %v748_v63 = vadd.f32 %v747_v62, %v683_v22 }
 0x1a6   : > { %1675 = vmatpush.msrb.mxu2 %v1000_v47 }
 0x1a7   : > { %v3604_v1 = vmax.f32 %v748_v63, 0.0 }
 0x1a8   : > { %v1364_v3 = vpop.f32.mrf.mxu1  ;;  %1676 = vmatpush.msrb.mxu2 %v993_v44 }
 0x1a9   : > { %1213 = vmatmul.f32.gmra.mxu2 %v3604_v1  ;;  %1343 = vmatmul.f32.gmra.mxu0 %v3604_v1 }
 0x1aa   : > { %1677 = vmatpush.msrb.mxu2 %v986_v6 }
 0x1ab   : > { %1493 = vmatmul.f32.vlgmr.msra.gmra.mxu3 %v3263_v28  ;;  %1623 = vmatmul.f32.vlgmr.msrb.gmra.mxu1 %v3263_v28 }
 0x1ae   : > { %v1234_v10 = vpop.f32.mrf.mxu3  ;;  %v1299_v11 = vpop.f32.mrf.mxu0 }
 0x1af   : > { %v1300_v16 = vadd.f32 %v1299_v11, %v3622_v8 }
 0x1b0   : > { %v1367_v17 = vpop.f32.mrf.mxu1 }
 0x1b1   : > { %v1365_v19 = vadd.f32 %v1364_v3, %v1300_v16  ;;  %1428 = vmatmul.f32.vlgmr.msra.gmra.mxu2 %v3275_v38  ;;  %1558 = vmatmul.f32.vlgmr.msrb.gmra.mxu0 %v3275_v38 }
 0x1b3   : > { %2399 = vtanh.f32 %v1365_v19  ;;  %1496 = vmatmul.f32.gmra.mxu3 %v3277_v40  ;;  %1626 = vmatmul.f32.gmra.mxu1 %v3277_v40 }
 0x1b4   : > { %v1169_v26 = vpop.f32.mrf.mxu2 }
 0x1b5   : > { %v1170_v29 = vadd.f32 %v1169_v26, %v3628_v20 }
 0x1b6   : > { %v1237_v31 = vpop.f32.mrf.mxu3  ;;  %v1302_v33 = vpop.f32.mrf.mxu0 }
 0x1b7   : > { %v1235_v34 = vadd.f32 %v1234_v10, %v1170_v29  ;;  %v1303_v35 = vadd.f32 %v1302_v33, %v3622_v8  ;;  %v1098_v10 = vld [vmem:[%s4329_s5 + $0x5d0] sm:$0xff] }
 0x1b8   : > { %v1370_v36 = vpop.f32.mrf.mxu1  ;;  %1742 = vmatpush.msrb.mxu3 %v1098_v10 }
 0x1b9   : > { %v2400_v39 = vpop.eup %2399  ;;  %2401 = vtanh.f32 %v1235_v34  ;;  %v1368_v43 = vadd.f32 %v1367_v17, %v1303_v35  ;;  %1431 = vmatmul.f32.gmra.mxu2 %v3291_v52  ;;  %1561 = vmatmul.f32.gmra.mxu0 %v3291_v52  ;;  %v979_v34 = vld [vmem:[%s4329_s5 + $0x218] sm:$0xff] }
 0x1ba   : > { %2175 = vst [vmem:[%s3643_s13 + $0x8] sm:$0xff] %v2400_v39  ;;  %v1091_v35 = vld [vmem:[%s4329_s5 + $0x598] sm:$0xff]  ;;  %1678 = vmatpush.msrb.mxu2 %v979_v34 }
 0x1bb   : > { %2403 = vtanh.f32 %v1368_v43  ;;  %1499 = vmatmul.f32.gmra.mxu3 %v3293_v54  ;;  %1629 = vmatmul.f32.gmra.mxu1 %v3293_v54 }
 0x1bc   : > { %v1172_v50 = vpop.f32.mrf.mxu2  ;;  %1743 = vmatpush.msrb.mxu3 %v1091_v35 }
 0x1bd   : > { %v1173_v53 = vadd.f32 %v1172_v50, %v3628_v20 }
 0x1be   : > { %v1240_v59 = vpop.f32.mrf.mxu3  ;;  %v1305_v60 = vpop.f32.mrf.mxu0 }
 0x1bf   : > { %v2402_v61 = vpop.eup %2401  ;;  %v1238_v22 = vadd.f32 %v1237_v31, %v1173_v53  ;;  %v1306_v62 = vadd.f32 %v1305_v60, %v3622_v8 }
 0x1c0   : > { %2174 = vst [vmem:[%s3643_s13] sm:$0xff] %v2402_v61  ;;  %v1373_v63 = vpop.f32.mrf.mxu1 }
 0x1c1   : > { %v2404_v3 = vpop.eup %2403  ;;  %2405 = vtanh.f32 %v1238_v22  ;;  %v1371_v27 = vadd.f32 %v1370_v36, %v1306_v62  ;;  %1434 = vmatmul.f32.gmra.mxu2 %v3307_v0  ;;  %1564 = vmatmul.f32.gmra.mxu0 %v3307_v0  ;;  %v972_v22 = vld [vmem:[%s4329_s5 + $0x1e0] sm:$0xff] }
 0x1c2   : > { %2183 = vst [vmem:[%s3643_s13 + $0x40] sm:$0xff] %v2404_v3  ;;  %v1084_v62 = vld [vmem:[%s4329_s5 + $0x560] sm:$0xff]  ;;  %1679 = vmatpush.msrb.mxu2 %v972_v22 }
 0x1c3   : > { %2407 = vtanh.f32 %v1371_v27  ;;  %1502 = vmatmul.f32.gmra.mxu3 %v3309_v2  ;;  %1632 = vmatmul.f32.gmra.mxu1 %v3309_v2 }
 0x1c4   : > { %v1175_v11 = vpop.f32.mrf.mxu2  ;;  %1744 = vmatpush.msrb.mxu3 %v1084_v62 }
 0x1c5   : > { %v1176_v16 = vadd.f32 %v1175_v11, %v3628_v20 }
 0x1c6   : > { %v1243_v17 = vpop.f32.mrf.mxu3  ;;  %v1308_v19 = vpop.f32.mrf.mxu0 }
 0x1c7   : > { %v2406_v47 = vpop.eup %2405  ;;  %v1241_v48 = vadd.f32 %v1240_v59, %v1176_v16  ;;  %v1309_v26 = vadd.f32 %v1308_v19, %v3622_v8 }
 0x1c8   : > { %2182 = vst [vmem:[%s3643_s13 + $0x38] sm:$0xff] %v2406_v47  ;;  %v1376_v29 = vpop.f32.mrf.mxu1 }
 0x1c9   : > { %v2408_v31 = vpop.eup %2407  ;;  %2409 = vtanh.f32 %v1241_v48  ;;  %v1374_v33 = vadd.f32 %v1373_v63, %v1309_v26  ;;  %1437 = vmatmul.f32.gmra.mxu2 %v3323_v12  ;;  %1567 = vmatmul.f32.gmra.mxu0 %v3323_v12  ;;  %v965_v48 = vld [vmem:[%s4329_s5 + $0x1a8] sm:$0xff] }
 0x1ca   : > { %2190 = vst [vmem:[%s3643_s13 + $0x78] sm:$0xff] %v2408_v31  ;;  %v1077_v26 = vld [vmem:[%s4329_s5 + $0x528] sm:$0xff]  ;;  %1680 = vmatpush.msrb.mxu2 %v965_v48  ;;  %v1127_v48 = vld [vmem:[%s4329_s5 + $0x6b8] sm:$0xff] }
 0x1cb   : > { %2411 = vtanh.f32 %v1374_v33  ;;  %1505 = vmatmul.f32.gmra.mxu3 %v3325_v14  ;;  %1635 = vmatmul.f32.gmra.mxu1 %v3325_v14 }
 0x1cc   : > { %v1178_v36 = vpop.f32.mrf.mxu2  ;;  %1745 = vmatpush.msrb.mxu3 %v1077_v26 }
 0x1cd   : > { %v1179_v39 = vadd.f32 %v1178_v36, %v3628_v20 }
 0x1ce   : > { %v1246_v43 = vpop.f32.mrf.mxu3  ;;  %v1311_v44 = vpop.f32.mrf.mxu0 }
 0x1cf   : > { %v2410_v45 = vpop.eup %2409  ;;  %v1244_v50 = vadd.f32 %v1243_v17, %v1179_v39  ;;  %v1312_v53 = vadd.f32 %v1311_v44, %v3622_v8 }
 0x1d0   : > { %2189 = vst [vmem:[%s3643_s13 + $0x70] sm:$0xff] %v2410_v45  ;;  %v1379_v59 = vpop.f32.mrf.mxu1 }
 0x1d1   : > { %v2412_v60 = vpop.eup %2411  ;;  %2413 = vtanh.f32 %v1244_v50  ;;  %v1377_v61 = vadd.f32 %v1376_v29, %v1312_v53  ;;  %1440 = vmatmul.f32.gmra.mxu2 %v3339_v23  ;;  %1570 = vmatmul.f32.gmra.mxu0 %v3339_v23  ;;  %v958_v50 = vld [vmem:[%s4329_s5 + $0x170] sm:$0xff] }
 0x1d2   : > { %2197 = vst [vmem:[%s3643_s13 + $0xb0] sm:$0xff] %v2412_v60  ;;  %v1070_v53 = vld [vmem:[%s4329_s5 + $0x4f0] sm:$0xff]  ;;  %1681 = vmatpush.msrb.mxu2 %v958_v50  ;;  %v1056_v50 = vld [vmem:[%s4329_s5 + $0x480] sm:$0xff] }
 0x1d3   : > { %2415 = vtanh.f32 %v1377_v61  ;;  %1508 = vmatmul.f32.gmra.mxu3 %v3341_v25  ;;  %1638 = vmatmul.f32.gmra.mxu1 %v3341_v25 }
 0x1d4   : > { %v1181_v63 = vpop.f32.mrf.mxu2  ;;  %1746 = vmatpush.msrb.mxu3 %v1070_v53  ;;  %v1113_v53 = vld [vmem:[%s4329_s5 + $0x648] sm:$0xff] }
 0x1d5   : > { %v1182_v3 = vadd.f32 %v1181_v63, %v3628_v20 }
 0x1d6   : > { %v1249_v27 = vpop.f32.mrf.mxu3  ;;  %v1314_v6 = vpop.f32.mrf.mxu0 }
 0x1d7   : > { %v2414_v10 = vpop.eup %2413  ;;  %v1247_v11 = vadd.f32 %v1246_v43, %v1182_v3  ;;  %v1315_v16 = vadd.f32 %v1314_v6, %v3622_v8 }
 0x1d8   : > { %2196 = vst [vmem:[%s3643_s13 + $0xa8] sm:$0xff] %v2414_v10  ;;  %v1382_v17 = vpop.f32.mrf.mxu1 }
 0x1d9   : > { %v2416_v19 = vpop.eup %2415  ;;  %2417 = vtanh.f32 %v1247_v11  ;;  %v1380_v47 = vadd.f32 %v1379_v59, %v1315_v16  ;;  %1443 = vmatmul.f32.gmra.mxu2 %v3355_v37  ;;  %1573 = vmatmul.f32.gmra.mxu0 %v3355_v37  ;;  %v951_v11 = vld [vmem:[%s4329_s5 + $0x138] sm:$0xff] }
 0x1da   : > { %2204 = vst [vmem:[%s3643_s13 + $0xe8] sm:$0xff] %v2416_v19  ;;  %v1063_v16 = vld [vmem:[%s4329_s5 + $0x4b8] sm:$0xff]  ;;  %1682 = vmatpush.msrb.mxu2 %v951_v11 }
 0x1db   : > { %2419 = vtanh.f32 %v1380_v47  ;;  %1511 = vmatmul.f32.gmra.mxu3 %v3357_v41  ;;  %1641 = vmatmul.f32.gmra.mxu1 %v3357_v41  ;;  %v1099_v11 = vld [vmem:[%s4329_s5 + $0x5d8] sm:$0xff] }
 0x1dc   : > { %v1184_v29 = vpop.f32.mrf.mxu2  ;;  %1747 = vmatpush.msrb.mxu3 %v1063_v16  ;;  %v1001_v16 = vld [vmem:[%s4329_s5 + $0x2c8] sm:$0xff] }
 0x1dd   : > { %v1185_v31 = vadd.f32 %v1184_v29, %v3628_v20 }
 0x1de   : > { %v1252_v33 = vpop.f32.mrf.mxu3  ;;  %v1317_v34 = vpop.f32.mrf.mxu0  ;;  %1748 = vmatpush.msrb.mxu3 %v1056_v50 }
 0x1df   : > { %v2418_v35 = vpop.eup %2417  ;;  %v1250_v36 = vadd.f32 %v1249_v27, %v1185_v31  ;;  %v1318_v39 = vadd.f32 %v1317_v34, %v3622_v8 }
 0x1e0   : > { %2203 = vst [vmem:[%s3643_s13 + $0xe0] sm:$0xff] %v2418_v35  ;;  %v1385_v43 = vpop.f32.mrf.mxu1  ;;  %v1120_v35 = vld [vmem:[%s4329_s5 + $0x680] sm:$0xff] }
 0x1e1   : > { %v2420_v44 = vpop.eup %2419  ;;  %2421 = vtanh.f32 %v1250_v36  ;;  %v1383_v45 = vadd.f32 %v1382_v17, %v1318_v39  ;;  %1446 = vmatmul.f32.gmra.mxu2 %v3371_v55  ;;  %1576 = vmatmul.f32.gmra.mxu0 %v3371_v55  ;;  %v1134_v17 = vld [vmem:[%s4329_s5 + $0x6f0] sm:$0xff] }
 0x1e2   : > { %2211 = vst [vmem:[%s3643_s13 + $0x120] sm:$0xff] %v2420_v44  ;;  %1867 = vmatpush.msra.mxu1 %v1134_v17  ;;  %v1022_v44 = vld [vmem:[%s4329_s5 + $0x370] sm:$0xff] }
 0x1e3   : > { %2423 = vtanh.f32 %v1383_v45  ;;  %1514 = vmatmul.f32.gmra.mxu3 %v3373_v57  ;;  %1644 = vmatmul.f32.gmra.mxu1 %v3373_v57  ;;  %v944_v45 = vld [vmem:[%s4329_s5 + $0x100] sm:$0xff] }
 0x1e4   : > { %v1187_v59 = vpop.f32.mrf.mxu2  ;;  %1868 = vmatpush.msra.mxu1 %v1127_v48  ;;  %1802 = vmatpush.msra.mxu0 %v1022_v44  ;;  %v1092_v48 = vld [vmem:[%s4329_s5 + $0x5a0] sm:$0xff] }
 0x1e5   : > { %v1188_v60 = vadd.f32 %v1187_v59, %v3628_v20  ;;  %v1015_v59 = vld [vmem:[%s4329_s5 + $0x338] sm:$0xff]  ;;  %1683 = vmatpush.msrb.mxu2 %v944_v45 }
 0x1e6   : > { %v1255_v61 = vpop.f32.mrf.mxu3  ;;  %v1320_v22 = vpop.f32.mrf.mxu0  ;;  %1869 = vmatpush.msra.mxu1 %v1120_v35  ;;  %1803 = vmatpush.msra.mxu0 %v1015_v59  ;;  %v987_v35 = vld [vmem:[%s4329_s5 + $0x258] sm:$0xff]  ;;  %v980_v59 = vld [vmem:[%s4329_s5 + $0x220] sm:$0xff] }
 0x1e7   : > { %v2422_v62 = vpop.eup %2421  ;;  %v1253_v63 = vadd.f32 %v1252_v33, %v1188_v60  ;;  %v1321_v3 = vadd.f32 %v1320_v22, %v3622_v8 }
 0x1e8   : > { %2210 = vst [vmem:[%s3643_s13 + $0x118] sm:$0xff] %v2422_v62  ;;  %v1388_v27 = vpop.f32.mrf.mxu1  ;;  %1870 = vmatpush.msra.mxu1 %v1113_v53  ;;  %v1008_v62 = vld [vmem:[%s4329_s5 + $0x300] sm:$0xff]  ;;  %v1078_v53 = vld [vmem:[%s4329_s5 + $0x530] sm:$0xff] }
 0x1e9   : > { %v2424_v6 = vpop.eup %2423  ;;  %2425 = vtanh.f32 %v1253_v63  ;;  %v1386_v10 = vadd.f32 %v1385_v43, %v1321_v3  ;;  %1449 = vmatmul.f32.gmra.mxu2 %v3387_v5  ;;  %1579 = vmatmul.f32.gmra.mxu0 %v3387_v5 }
 0x1ea   : > { %2218 = vst [vmem:[%s3643_s13 + $0x158] sm:$0xff] %v2424_v6  ;;  %1804 = vmatpush.msra.mxu0 %v1008_v62  ;;  %v1071_v62 = vld [vmem:[%s4329_s5 + $0x4f8] sm:$0xff] }
 0x1eb   : > { %2427 = vtanh.f32 %v1386_v10  ;;  %1517 = vmatmul.f32.gmra.mxu3 %v3389_v7  ;;  %1647 = vmatmul.f32.gmra.mxu1 %v3389_v7 }
 0x1ec   : > { %v1190_v19 = vpop.f32.mrf.mxu2  ;;  %1805 = vmatpush.msra.mxu0 %v1001_v16 }
 0x1ed   : > { %v1191_v47 = vadd.f32 %v1190_v19, %v3628_v20 }
 0x1ee   : > { %v1258_v26 = vpop.f32.mrf.mxu3  ;;  %v1323_v29 = vpop.f32.mrf.mxu0 }
 0x1ef   : > { %v2426_v31 = vpop.eup %2425  ;;  %v1256_v33 = vadd.f32 %v1255_v61, %v1191_v47  ;;  %v1324_v34 = vadd.f32 %v1323_v29, %v3622_v8  ;;  %v1106_v61 = vld [vmem:[%s4329_s5 + $0x610] sm:$0xff]  ;;  %v1049_v29 = vld [vmem:[%s4329_s5 + $0x448] sm:$0xff] }
 0x1f0   : > { %2217 = vst [vmem:[%s3643_s13 + $0x150] sm:$0xff] %v2426_v31  ;;  %v1391_v36 = vpop.f32.mrf.mxu1  ;;  %1871 = vmatpush.msra.mxu1 %v1106_v61  ;;  %v994_v31 = vld [vmem:[%s4329_s5 + $0x290] sm:$0xff]  ;;  %1749 = vmatpush.msrb.mxu3 %v1049_v29  ;;  %v1057_v29 = vld [vmem:[%s4329_s5 + $0x488] sm:$0xff] }
 0x1f1   : > { %v2428_v39 = vpop.eup %2427  ;;  %2429 = vtanh.f32 %v1256_v33  ;;  %v1389_v43 = vadd.f32 %v1388_v27, %v1324_v34  ;;  %1452 = vmatmul.f32.gmra.mxu2 %v3409_v21  ;;  %1582 = vmatmul.f32.gmra.mxu0 %v3409_v21  ;;  %v1085_v34 = vld [vmem:[%s4329_s5 + $0x568] sm:$0xff] }
 0x1f2   : > { %2225 = vst [vmem:[%s3643_s13 + $0x190] sm:$0xff] %v2428_v39  ;;  %1872 = vmatpush.msra.mxu1 %v1099_v11  ;;  %1806 = vmatpush.msra.mxu0 %v994_v31  ;;  %v966_v11 = vld [vmem:[%s4329_s5 + $0x1b0] sm:$0xff]  ;;  %v1035_v31 = vld [vmem:[%s4329_s5 + $0x3d8] sm:$0xff] }
 0x1f3   : > { %2431 = vtanh.f32 %v1389_v43  ;;  %1520 = vmatmul.f32.gmra.mxu3 %v3414_v24  ;;  %1650 = vmatmul.f32.gmra.mxu1 %v3414_v24 }
 0x1f4   : > { %v1193_v60 = vpop.f32.mrf.mxu2  ;;  %1873 = vmatpush.msra.mxu1 %v1092_v48  ;;  %1807 = vmatpush.msra.mxu0 %v987_v35 }
 0x1f5   : > { %v1194_v22 = vadd.f32 %v1193_v60, %v3628_v20 }
 0x1f6   : > { %v1261_v63 = vpop.f32.mrf.mxu3  ;;  %v1326_v3 = vpop.f32.mrf.mxu0  ;;  %1874 = vmatpush.msra.mxu1 %v1085_v34  ;;  %1808 = vmatpush.msra.mxu0 %v980_v59  ;;  %v945_v59 = vld [vmem:[%s4329_s5 + $0x108] sm:$0xff] }
 0x1f7   : > { %v2430_v27 = vpop.eup %2429  ;;  %v1259_v6 = vadd.f32 %v1258_v26, %v1194_v22  ;;  %v1327_v10 = vadd.f32 %v1326_v3, %v3622_v8  ;;  %v937_v26 = vld [vmem:[%s4329_s5 + $0xc8] sm:$0xff]  ;;  %v1042_v3 = vld [vmem:[%s4329_s5 + $0x410] sm:$0xff] }
 0x1f8   : > { %2224 = vst [vmem:[%s3643_s13 + $0x188] sm:$0xff] %v2430_v27  ;;  %v1394_v17 = vpop.f32.mrf.mxu1  ;;  %1684 = vmatpush.msrb.mxu2 %v937_v26  ;;  %1875 = vmatpush.msra.mxu1 %v1078_v53  ;;  %v973_v27 = vld [vmem:[%s4329_s5 + $0x1e8] sm:$0xff] }
 0x1f9   : > { %v2432_v19 = vpop.eup %2431  ;;  %2433 = vtanh.f32 %v1259_v6  ;;  %v1392_v47 = vadd.f32 %v1391_v36, %v1327_v10  ;;  %1455 = vmatmul.f32.gmra.mxu2 %v3446_v49  ;;  %1585 = vmatmul.f32.gmra.mxu0 %v3446_v49  ;;  %v1064_v10 = vld [vmem:[%s4329_s5 + $0x4c0] sm:$0xff] }
 0x1fa   : > { %2232 = vst [vmem:[%s3643_s13 + $0x1c8] sm:$0xff] %v2432_v19  ;;  %1750 = vmatpush.msrb.mxu3 %v1042_v3  ;;  %1876 = vmatpush.msra.mxu1 %v1071_v62 }
 0x1fb   : > { %2435 = vtanh.f32 %v1392_v47  ;;  %1523 = vmatmul.f32.gmra.mxu3 %v3454_v56  ;;  %1653 = vmatmul.f32.gmra.mxu1 %v3454_v56 }
 0x1fc   : > { %v1196_v33 = vpop.f32.mrf.mxu2  ;;  %1809 = vmatpush.msra.mxu0 %v973_v27  ;;  %1877 = vmatpush.msra.mxu1 %v1064_v10  ;;  %v938_v10 = vld [vmem:[%s4329_s5 + $0xd0] sm:$0xff] }
 0x1fd   : > { %v1197_v36 = vadd.f32 %v1196_v33, %v3628_v20  ;;  %v959_v33 = vld [vmem:[%s4329_s5 + $0x178] sm:$0xff]  ;;  %1751 = vmatpush.msrb.mxu3 %v1035_v31  ;;  %v917_v31 = vld [vmem:[%s4329_s5 + $0x28] sm:$0xff] }
 0x1fe   : > { %v1264_v39 = vpop.f32.mrf.mxu3  ;;  %v1329_v43 = vpop.f32.mrf.mxu0  ;;  %1810 = vmatpush.msra.mxu0 %v966_v11  ;;  %1878 = vmatpush.msra.mxu1 %v1057_v29  ;;  %v1029_v11 = vld [vmem:[%s4329_s5 + $0x3a8] sm:$0xff] }
 0x1ff   : > { %v2434_v44 = vpop.eup %2433  ;;  %v1262_v45 = vadd.f32 %v1261_v63, %v1197_v36  ;;  %v1330_v50 = vadd.f32 %v1329_v43, %v3622_v8  ;;  %v930_v63 = vld [vmem:[%s4329_s5 + $0x90] sm:$0xff]  ;;  %v923_v43 = vld [vmem:[%s4329_s5 + $0x58] sm:$0xff] }
 0x200   : > { %2231 = vst [vmem:[%s3643_s13 + $0x1c0] sm:$0xff] %v2434_v44  ;;  %v1397_v60 = vpop.f32.mrf.mxu1  ;;  %1685 = vmatpush.msrb.mxu2 %v930_v63  ;;  %1811 = vmatpush.msra.mxu0 %v959_v33  ;;  %v952_v44 = vld [vmem:[%s4329_s5 + $0x140] sm:$0xff] }
 0x201   : > { %v2436_v61 = vpop.eup %2435  ;;  %2437 = vtanh.f32 %v1262_v45  ;;  %v1395_v22 = vadd.f32 %v1394_v17, %v1330_v50  ;;  %1458 = vmatmul.f32.gmra.mxu2 %v3483_v13  ;;  %1588 = vmatmul.f32.gmra.mxu0 %v3483_v13  ;;  %v1028_v45 = vld [vmem:[%s4329_s5 + $0x3a0] sm:$0xff]  ;;  %v1043_v50 = vld [vmem:[%s4329_s5 + $0x418] sm:$0xff] }
 0x202   : > { %2239 = vst [vmem:[%s3643_s13 + $0x200] sm:$0xff] %v2436_v61  ;;  %1686 = vmatpush.msrb.mxu2 %v923_v43  ;;  %1812 = vmatpush.msra.mxu0 %v952_v44  ;;  %v1036_v61 = vld [vmem:[%s4329_s5 + $0x3e0] sm:$0xff] }
 0x203   : > { %2439 = vtanh.f32 %v1395_v22  ;;  %1526 = vmatmul.f32.gmra.mxu3 %v3491_v18  ;;  %1656 = vmatmul.f32.gmra.mxu1 %v3491_v18 }
 0x204   : > { %v1199_v6 = vpop.f32.mrf.mxu2  ;;  %1752 = vmatpush.msrb.mxu3 %v1028_v45  ;;  %1813 = vmatpush.msra.mxu0 %v945_v59 }
 0x205   : > { %v1200_v16 = vadd.f32 %v1199_v6, %v3628_v20  ;;  %v916_v6 = vld [vmem:[%s4329_s5 + $0x20] sm:$0xff] }
 0x206   : > { %v1267_v17 = vpop.f32.mrf.mxu3  ;;  %v1332_v19 = vpop.f32.mrf.mxu0  ;;  %1687 = vmatpush.msrb.mxu2 %v916_v6  ;;  %1814 = vmatpush.msra.mxu0 %v938_v10 }
 0x207   : > { %v2438_v47 = vpop.eup %2437  ;;  %v1265_v48 = vadd.f32 %v1264_v39, %v1200_v16  ;;  %v1333_v26 = vadd.f32 %v1332_v19, %v3622_v8  ;;  %v1050_v39 = vld [vmem:[%s4329_s5 + $0x450] sm:$0xff] }
 0x208   : > { %2238 = vst [vmem:[%s3643_s13 + $0x1f8] sm:$0xff] %v2438_v47  ;;  %v1400_v34 = vpop.f32.mrf.mxu1  ;;  %1879 = vmatpush.msra.mxu1 %v1050_v39  ;;  %v931_v47 = vld [vmem:[%s4329_s5 + $0x98] sm:$0xff] }
 0x209   : > { %v2440_v35 = vpop.eup %2439  ;;  %2441 = vtanh.f32 %v1265_v48  ;;  %v1398_v36 = vadd.f32 %v1397_v60, %v1333_v26  ;;  %1461 = vmatmul.f32.gmra.mxu2 %v3520_v42  ;;  %1591 = vmatmul.f32.gmra.mxu0 %v3520_v42  ;;  %v924_v48 = vld [vmem:[%s4329_s5 + $0x60] sm:$0xff] }
 0x20a   : > { %2246 = vst [vmem:[%s3643_s13 + $0x238] sm:$0xff] %v2440_v35  ;;  %1880 = vmatpush.msra.mxu1 %v1043_v50  ;;  %1815 = vmatpush.msra.mxu0 %v931_v47  ;;  %v1023_v50 = vld [vmem:[%s4329_s5 + $0x378] sm:$0xff] }
 0x20b   : > { %2443 = vtanh.f32 %v1398_v36  ;;  %1529 = vmatmul.f32.gmra.mxu3 %v3528_v46  ;;  %1659 = vmatmul.f32.gmra.mxu1 %v3528_v46 }
 0x20c   : > { %v1202_v53 = vpop.f32.mrf.mxu2  ;;  %1881 = vmatpush.msra.mxu1 %v1036_v61  ;;  %1816 = vmatpush.msra.mxu0 %v924_v48 }
 0x20d   : > { %v1203_v60 = vadd.f32 %v1202_v53, %v3628_v20  ;;  %v1135_v53 = vld [vmem:[%s4329_s5 + $0x6f8] sm:$0xff]  ;;  %1932 = vmatpush.msra.mxu2 %v1023_v50 }
 0x20e   : > { %v1270_v22 = vpop.f32.mrf.mxu3  ;;  %v1335_v62 = vpop.f32.mrf.mxu0  ;;  %1882 = vmatpush.msra.mxu1 %v1029_v11  ;;  %1817 = vmatpush.msra.mxu0 %v917_v31  ;;  %v1016_v11 = vld [vmem:[%s4329_s5 + $0x340] sm:$0xff] }
 0x20f   : > { %v2442_v63 = vpop.eup %2441  ;;  %v1268_v3 = vadd.f32 %v1267_v17, %v1203_v60  ;;  %v1336_v27 = vadd.f32 %v1335_v62, %v3622_v8  ;;  %1997 = vmatpush.msra.mxu3 %v1135_v53  ;;  %1933 = vmatpush.msra.mxu2 %v1016_v11 }
 0x210   : > { %2245 = vst [vmem:[%s3643_s13 + $0x230] sm:$0xff] %v2442_v63  ;;  %v1403_v16 = vpop.f32.mrf.mxu1 }
 0x211   : > { %v2444_v17 = vpop.eup %2443  ;;  %2445 = vtanh.f32 %v1268_v3  ;;  %v1401_v19 = vadd.f32 %v1400_v34, %v1336_v27  ;;  %1464 = vmatmul.f32.gmra.mxu2 %v3557_v9  ;;  %1594 = vmatmul.f32.gmra.mxu0 %v3557_v9 }
 0x212   : > { %2253 = vst [vmem:[%s3643_s13 + $0x270] sm:$0xff] %v2444_v17 }
 0x213   : > { %2447 = vtanh.f32 %v1401_v19  ;;  %1532 = vmatmul.f32.gmra.mxu3 %v3562_v15  ;;  %1662 = vmatmul.f32.gmra.mxu1 %v3562_v15 }
 0x214   : > { %v1205_v26 = vpop.f32.mrf.mxu2 }
 0x215   : > { %v1206_v29 = vadd.f32 %v1205_v26, %v3628_v20 }
 0x216   : > { %v1273_v33 = vpop.f32.mrf.mxu3  ;;  %v1338_v34 = vpop.f32.mrf.mxu0 }
 0x217   : > { %v2446_v35 = vpop.eup %2445  ;;  %v1271_v36 = vadd.f32 %v1270_v22, %v1206_v29  ;;  %v1339_v39 = vadd.f32 %v1338_v34, %v3622_v8 }
 0x218   : > { %2252 = vst [vmem:[%s3643_s13 + $0x268] sm:$0xff] %v2446_v35  ;;  %v1406_v43 = vpop.f32.mrf.mxu1 }
 0x219   : > { %v2448_v44 = vpop.eup %2447  ;;  %2449 = vtanh.f32 %v1271_v36  ;;  %v1404_v45 = vadd.f32 %v1403_v16, %v1339_v39  ;;  %1467 = vmatmul.f32.gmra.mxu2 %v3573_v30  ;;  %1597 = vmatmul.f32.gmra.mxu0 %v3573_v30  ;;  %v1128_v16 = vld [vmem:[%s4329_s5 + $0x6c0] sm:$0xff]  ;;  %v1009_v36 = vld [vmem:[%s4329_s5 + $0x308] sm:$0xff] }
 0x21a   : > { %2260 = vst [vmem:[%s3643_s13 + $0x2a8] sm:$0xff] %v2448_v44  ;;  %1998 = vmatpush.msra.mxu3 %v1128_v16  ;;  %v1121_v39 = vld [vmem:[%s4329_s5 + $0x688] sm:$0xff]  ;;  %1934 = vmatpush.msra.mxu2 %v1009_v36 }
 0x21b   : > { %2451 = vtanh.f32 %v1404_v45  ;;  %1535 = vmatmul.f32.gmra.mxu3 %v3575_v32  ;;  %1665 = vmatmul.f32.gmra.mxu1 %v3575_v32 }
 0x21c   : > { %v1208_v59 = vpop.f32.mrf.mxu2  ;;  %1999 = vmatpush.msra.mxu3 %v1121_v39 }
 0x21d   : > { %v1209_v60 = vadd.f32 %v1208_v59, %v3628_v20 }
 0x21e   : > { %v1276_v61 = vpop.f32.mrf.mxu3  ;;  %v1341_v22 = vpop.f32.mrf.mxu0 }
 0x21f   : > { %v2450_v62 = vpop.eup %2449  ;;  %v1274_v63 = vadd.f32 %v1273_v33, %v1209_v60  ;;  %v1342_v3 = vadd.f32 %v1341_v22, %v3622_v8 }
 0x220   : > { %2259 = vst [vmem:[%s3643_s13 + $0x2a0] sm:$0xff] %v2450_v62  ;;  %v1409_v27 = vpop.f32.mrf.mxu1 }
 0x221   : > { %v2452_v6 = vpop.eup %2451  ;;  %2453 = vtanh.f32 %v1274_v63  ;;  %v1407_v10 = vadd.f32 %v1406_v43, %v1342_v3  ;;  %1470 = vmatmul.f32.gmra.mxu2 %v3589_v51  ;;  %1600 = vmatmul.f32.gmra.mxu0 %v3589_v51  ;;  %v3958_v63 = vperm.slane %v3609_v4, 2  ;;  %v1114_v3 = vld [vmem:[%s4329_s5 + $0x650] sm:$0xff] }
 0x222   : > { %2267 = vst [vmem:[%s3643_s13 + $0x2e0] sm:$0xff] %v2452_v6  ;;  %2000 = vmatpush.msra.mxu3 %v1114_v3 }
 0x223   : > { %2455 = vtanh.f32 %v1407_v10  ;;  %1538 = vmatmul.f32.gmra.mxu3 %v3591_v58  ;;  %1668 = vmatmul.f32.gmra.mxu1 %v3591_v58 }
 0x224   : > { %v1211_v17 = vpop.f32.mrf.mxu2 }
 0x225   : > { %v1212_v19 = vadd.f32 %v1211_v17, %v3628_v20 }
 0x226   : > { %v1279_v47 = vpop.f32.mrf.mxu3  ;;  %v1344_v48 = vpop.f32.mrf.mxu0 }
 0x227   : > { %v2454_v26 = vpop.eup %2453  ;;  %v1277_v29 = vadd.f32 %v1276_v61, %v1212_v19  ;;  %v1345_v31 = vadd.f32 %v1344_v48, %v3622_v8  ;;  %v3950_v8 = vperm.slane %v3609_v4, 3 }
 0x228   : > { %2266 = vst [vmem:[%s3643_s13 + $0x2d8] sm:$0xff] %v2454_v26  ;;  %v1624_v33 = vpop.f32.mrf.mxu1  ;;  %v995_v26 = vld [vmem:[%s4329_s5 + $0x298] sm:$0xff] }
 0x229   : > { %v2456_v34 = vpop.eup %2455  ;;  %2457 = vtanh.f32 %v1277_v29  ;;  %v1410_v35 = vadd.f32 %v1409_v27, %v1345_v31  ;;  %1473 = vmatmul.f32.gmra.mxu2 %v3604_v1  ;;  %1603 = vmatmul.f32.gmra.mxu0 %v3604_v1  ;;  %v1107_v29 = vld [vmem:[%s4329_s5 + $0x618] sm:$0xff] }
 0x22a   : > { %2274 = vst [vmem:[%s3643_s13 + $0x318] sm:$0xff] %v2456_v34  ;;  %2001 = vmatpush.msra.mxu3 %v1107_v29 }
 0x22b   : > { %2459 = vtanh.f32 %v1410_v35  ;;  %1753 = vmatmul.f32.vlgmr.msrb.gmra.mxu3 %v3263_v28  ;;  %1883 = vmatmul.f32.vlgmr.msra.gmra.mxu1 %v3263_v28 }
 0x22c   : > { %v1214_v43 = vpop.f32.mrf.mxu2 }
 0x22d   : > { %v1215_v44 = vadd.f32 %v1214_v43, %v3628_v20  ;;  %v1002_v20 = vld [vmem:[%s4329_s5 + $0x2d0] sm:$0xff] }
 0x22e   : > { %v1494_v45 = vpop.f32.mrf.mxu3  ;;  %v1559_v50 = vpop.f32.mrf.mxu0  ;;  %1935 = vmatpush.msra.mxu2 %v1002_v20 }
 0x22f   : > { %v2458_v53 = vpop.eup %2457  ;;  %v1280_v59 = vadd.f32 %v1279_v47, %v1215_v44  ;;  %v1560_v60 = vadd.f32 %v1559_v50, %v3950_v8 }
 0x230   : > { %2273 = vst [vmem:[%s3643_s13 + $0x310] sm:$0xff] %v2458_v53  ;;  %v1627_v61 = vpop.f32.mrf.mxu1  ;;  %1936 = vmatpush.msra.mxu2 %v995_v26  ;;  %v988_v53 = vld [vmem:[%s4329_s5 + $0x260] sm:$0xff] }
 0x231   : > { %v2460_v22 = vpop.eup %2459  ;;  %2461 = vtanh.f32 %v1280_v59  ;;  %v1625_v62 = vadd.f32 %v1624_v33, %v1560_v60  ;;  %1688 = vmatmul.f32.vlgmr.msrb.gmra.mxu2 %v3275_v38  ;;  %1818 = vmatmul.f32.vlgmr.msra.gmra.mxu0 %v3275_v38  ;;  %v1100_v59 = vld [vmem:[%s4329_s5 + $0x5e0] sm:$0xff] }
 0x232   : > { %2281 = vst [vmem:[%s3643_s13 + $0x350] sm:$0xff] %v2460_v22  ;;  %1937 = vmatpush.msra.mxu2 %v988_v53  ;;  %2002 = vmatpush.msra.mxu3 %v1100_v59 }
 0x233   : > { %2463 = vtanh.f32 %v1625_v62  ;;  %1756 = vmatmul.f32.gmra.mxu3 %v3277_v40  ;;  %1886 = vmatmul.f32.gmra.mxu1 %v3277_v40 }
 0x234   : > { %v1429_v27 = vpop.f32.mrf.mxu2 }
 0x235   : > { %v1430_v4 = vadd.f32 %v1429_v27, %v3958_v63 }
 0x236   : > { %v1497_v6 = vpop.f32.mrf.mxu3  ;;  %v1562_v10 = vpop.f32.mrf.mxu0 }
 0x237   : > { %v2462_v11 = vpop.eup %2461  ;;  %v1495_v16 = vadd.f32 %v1494_v45, %v1430_v4  ;;  %v1563_v17 = vadd.f32 %v1562_v10, %v3950_v8 }
 0x238   : > { %2280 = vst [vmem:[%s3643_s13 + $0x348] sm:$0xff] %v2462_v11  ;;  %v1630_v19 = vpop.f32.mrf.mxu1  ;;  %v981_v11 = vld [vmem:[%s4329_s5 + $0x228] sm:$0xff] }
 0x239   : > { %v2464_v47 = vpop.eup %2463  ;;  %2465 = vtanh.f32 %v1495_v16  ;;  %v1628_v48 = vadd.f32 %v1627_v61, %v1563_v17  ;;  %1691 = vmatmul.f32.gmra.mxu2 %v3291_v52  ;;  %1821 = vmatmul.f32.gmra.mxu0 %v3291_v52  ;;  %v1093_v16 = vld [vmem:[%s4329_s5 + $0x5a8] sm:$0xff] }
 0x23a   : > { %2177 = vst [vmem:[%s3643_s13 + $0x18] sm:$0xff] %v2464_v47  ;;  %1938 = vmatpush.msra.mxu2 %v981_v11  ;;  %2003 = vmatpush.msra.mxu3 %v1093_v16 }
 0x23b   : > { %2467 = vtanh.f32 %v1628_v48  ;;  %1759 = vmatmul.f32.gmra.mxu3 %v3293_v54  ;;  %1889 = vmatmul.f32.gmra.mxu1 %v3293_v54 }
 0x23c   : > { %v1432_v31 = vpop.f32.mrf.mxu2 }
 0x23d   : > { %v1433_v33 = vadd.f32 %v1432_v31, %v3958_v63 }
 0x23e   : > { %v1500_v34 = vpop.f32.mrf.mxu3  ;;  %v1565_v35 = vpop.f32.mrf.mxu0 }
 0x23f   : > { %v2466_v36 = vpop.eup %2465  ;;  %v1498_v39 = vadd.f32 %v1497_v6, %v1433_v33  ;;  %v1566_v43 = vadd.f32 %v1565_v35, %v3950_v8 }
 0x240   : > { %2176 = vst [vmem:[%s3643_s13 + $0x10] sm:$0xff] %v2466_v36  ;;  %v1633_v44 = vpop.f32.mrf.mxu1  ;;  %v974_v36 = vld [vmem:[%s4329_s5 + $0x1f0] sm:$0xff] }
 0x241   : > { %v2468_v45 = vpop.eup %2467  ;;  %2469 = vtanh.f32 %v1498_v39  ;;  %v1631_v50 = vadd.f32 %v1630_v19, %v1566_v43  ;;  %1694 = vmatmul.f32.gmra.mxu2 %v3307_v0  ;;  %1824 = vmatmul.f32.gmra.mxu0 %v3307_v0  ;;  %v1086_v39 = vld [vmem:[%s4329_s5 + $0x570] sm:$0xff] }
 0x242   : > { %2185 = vst [vmem:[%s3643_s13 + $0x50] sm:$0xff] %v2468_v45  ;;  %1939 = vmatpush.msra.mxu2 %v974_v36  ;;  %2004 = vmatpush.msra.mxu3 %v1086_v39 }
 0x243   : > { %2471 = vtanh.f32 %v1631_v50  ;;  %1762 = vmatmul.f32.gmra.mxu3 %v3309_v2  ;;  %1892 = vmatmul.f32.gmra.mxu1 %v3309_v2 }
 0x244   : > { %v1435_v60 = vpop.f32.mrf.mxu2 }
 0x245   : > { %v1436_v61 = vadd.f32 %v1435_v60, %v3958_v63 }
 0x246   : > { %v1503_v22 = vpop.f32.mrf.mxu3  ;;  %v1568_v62 = vpop.f32.mrf.mxu0 }
 0x247   : > { %v2470_v20 = vpop.eup %2469  ;;  %v1501_v3 = vadd.f32 %v1500_v34, %v1436_v61  ;;  %v1569_v27 = vadd.f32 %v1568_v62, %v3950_v8 }
 0x248   : > { %2184 = vst [vmem:[%s3643_s13 + $0x48] sm:$0xff] %v2470_v20  ;;  %v1636_v4 = vpop.f32.mrf.mxu1  ;;  %v967_v20 = vld [vmem:[%s4329_s5 + $0x1b8] sm:$0xff] }
 0x249   : > { %v2472_v6 = vpop.eup %2471  ;;  %2473 = vtanh.f32 %v1501_v3  ;;  %v1634_v10 = vadd.f32 %v1633_v44, %v1569_v27  ;;  %1697 = vmatmul.f32.gmra.mxu2 %v3323_v12  ;;  %1827 = vmatmul.f32.gmra.mxu0 %v3323_v12  ;;  %v1079_v3 = vld [vmem:[%s4329_s5 + $0x538] sm:$0xff] }
 0x24a   : > { %2192 = vst [vmem:[%s3643_s13 + $0x88] sm:$0xff] %v2472_v6  ;;  %1940 = vmatpush.msra.mxu2 %v967_v20  ;;  %2005 = vmatpush.msra.mxu3 %v1079_v3 }
 0x24b   : > { %2475 = vtanh.f32 %v1634_v10  ;;  %1765 = vmatmul.f32.gmra.mxu3 %v3325_v14  ;;  %1895 = vmatmul.f32.gmra.mxu1 %v3325_v14 }
 0x24c   : > { %v1438_v17 = vpop.f32.mrf.mxu2 }
 0x24d   : > { %v1439_v19 = vadd.f32 %v1438_v17, %v3958_v63 }
 0x24e   : > { %v1506_v47 = vpop.f32.mrf.mxu3  ;;  %v1571_v48 = vpop.f32.mrf.mxu0 }
 0x24f   : > { %v2474_v26 = vpop.eup %2473  ;;  %v1504_v29 = vadd.f32 %v1503_v22, %v1439_v19  ;;  %v1572_v31 = vadd.f32 %v1571_v48, %v3950_v8 }
 0x250   : > { %2191 = vst [vmem:[%s3643_s13 + $0x80] sm:$0xff] %v2474_v26  ;;  %v1639_v33 = vpop.f32.mrf.mxu1  ;;  %v960_v26 = vld [vmem:[%s4329_s5 + $0x180] sm:$0xff] }
 0x251   : > { %v2476_v34 = vpop.eup %2475  ;;  %2477 = vtanh.f32 %v1504_v29  ;;  %v1637_v35 = vadd.f32 %v1636_v4, %v1572_v31  ;;  %1700 = vmatmul.f32.gmra.mxu2 %v3339_v23  ;;  %1830 = vmatmul.f32.gmra.mxu0 %v3339_v23  ;;  %v1072_v29 = vld [vmem:[%s4329_s5 + $0x500] sm:$0xff] }
 0x252   : > { %2199 = vst [vmem:[%s3643_s13 + $0xc0] sm:$0xff] %v2476_v34  ;;  %1941 = vmatpush.msra.mxu2 %v960_v26  ;;  %2006 = vmatpush.msra.mxu3 %v1072_v29 }
 0x253   : > { %2479 = vtanh.f32 %v1637_v35  ;;  %1768 = vmatmul.f32.gmra.mxu3 %v3341_v25  ;;  %1898 = vmatmul.f32.gmra.mxu1 %v3341_v25 }
 0x254   : > { %v1441_v43 = vpop.f32.mrf.mxu2 }
 0x255   : > { %v1442_v44 = vadd.f32 %v1441_v43, %v3958_v63 }
 0x256   : > { %v1509_v45 = vpop.f32.mrf.mxu3  ;;  %v1574_v50 = vpop.f32.mrf.mxu0 }
 0x257   : > { %v2478_v53 = vpop.eup %2477  ;;  %v1507_v59 = vadd.f32 %v1506_v47, %v1442_v44  ;;  %v1575_v60 = vadd.f32 %v1574_v50, %v3950_v8 }
 0x258   : > { %2198 = vst [vmem:[%s3643_s13 + $0xb8] sm:$0xff] %v2478_v53  ;;  %v1642_v61 = vpop.f32.mrf.mxu1  ;;  %v953_v53 = vld [vmem:[%s4329_s5 + $0x148] sm:$0xff] }
 0x259   : > { %v2480_v22 = vpop.eup %2479  ;;  %2481 = vtanh.f32 %v1507_v59  ;;  %v1640_v62 = vadd.f32 %v1639_v33, %v1575_v60  ;;  %1703 = vmatmul.f32.gmra.mxu2 %v3355_v37  ;;  %1833 = vmatmul.f32.gmra.mxu0 %v3355_v37  ;;  %v1065_v59 = vld [vmem:[%s4329_s5 + $0x4c8] sm:$0xff] }
 0x25a   : > { %2206 = vst [vmem:[%s3643_s13 + $0xf8] sm:$0xff] %v2480_v22  ;;  %1942 = vmatpush.msra.mxu2 %v953_v53  ;;  %2007 = vmatpush.msra.mxu3 %v1065_v59 }
 0x25b   : > { %2483 = vtanh.f32 %v1640_v62  ;;  %1771 = vmatmul.f32.gmra.mxu3 %v3357_v41  ;;  %1901 = vmatmul.f32.gmra.mxu1 %v3357_v41 }
 0x25c   : > { %v1444_v27 = vpop.f32.mrf.mxu2 }
 0x25d   : > { %v1445_v4 = vadd.f32 %v1444_v27, %v3958_v63 }
 0x25e   : > { %v1512_v6 = vpop.f32.mrf.mxu3  ;;  %v1577_v10 = vpop.f32.mrf.mxu0 }
 0x25f   : > { %v2482_v11 = vpop.eup %2481  ;;  %v1510_v16 = vadd.f32 %v1509_v45, %v1445_v4  ;;  %v1578_v17 = vadd.f32 %v1577_v10, %v3950_v8 }
 0x260   : > { %2205 = vst [vmem:[%s3643_s13 + $0xf0] sm:$0xff] %v2482_v11  ;;  %v1645_v19 = vpop.f32.mrf.mxu1  ;;  %v946_v11 = vld [vmem:[%s4329_s5 + $0x110] sm:$0xff] }
 0x261   : > { %v2484_v47 = vpop.eup %2483  ;;  %2485 = vtanh.f32 %v1510_v16  ;;  %v1643_v48 = vadd.f32 %v1642_v61, %v1578_v17  ;;  %1706 = vmatmul.f32.gmra.mxu2 %v3371_v55  ;;  %1836 = vmatmul.f32.gmra.mxu0 %v3371_v55  ;;  %v1058_v16 = vld [vmem:[%s4329_s5 + $0x490] sm:$0xff] }
 0x262   : > { %2213 = vst [vmem:[%s3643_s13 + $0x130] sm:$0xff] %v2484_v47  ;;  %1943 = vmatpush.msra.mxu2 %v946_v11  ;;  %2008 = vmatpush.msra.mxu3 %v1058_v16 }
 0x263   : > { %2487 = vtanh.f32 %v1643_v48  ;;  %1774 = vmatmul.f32.gmra.mxu3 %v3373_v57  ;;  %1904 = vmatmul.f32.gmra.mxu1 %v3373_v57 }
 0x264   : > { %v1447_v31 = vpop.f32.mrf.mxu2 }
 0x265   : > { %v1448_v33 = vadd.f32 %v1447_v31, %v3958_v63 }
 0x266   : > { %v1515_v34 = vpop.f32.mrf.mxu3  ;;  %v1580_v35 = vpop.f32.mrf.mxu0 }
 0x267   : > { %v2486_v36 = vpop.eup %2485  ;;  %v1513_v39 = vadd.f32 %v1512_v6, %v1448_v33  ;;  %v1581_v43 = vadd.f32 %v1580_v35, %v3950_v8 }
 0x268   : > { %2212 = vst [vmem:[%s3643_s13 + $0x128] sm:$0xff] %v2486_v36  ;;  %v1648_v44 = vpop.f32.mrf.mxu1  ;;  %v939_v36 = vld [vmem:[%s4329_s5 + $0xd8] sm:$0xff] }
 0x269   : > { %v2488_v45 = vpop.eup %2487  ;;  %2489 = vtanh.f32 %v1513_v39  ;;  %v1646_v50 = vadd.f32 %v1645_v19, %v1581_v43  ;;  %1709 = vmatmul.f32.gmra.mxu2 %v3387_v5  ;;  %1839 = vmatmul.f32.gmra.mxu0 %v3387_v5  ;;  %v1051_v39 = vld [vmem:[%s4329_s5 + $0x458] sm:$0xff] }
 0x26a   : > { %2220 = vst [vmem:[%s3643_s13 + $0x168] sm:$0xff] %v2488_v45  ;;  %1944 = vmatpush.msra.mxu2 %v939_v36  ;;  %2009 = vmatpush.msra.mxu3 %v1051_v39 }
 0x26b   : > { %2491 = vtanh.f32 %v1646_v50  ;;  %1777 = vmatmul.f32.gmra.mxu3 %v3389_v7  ;;  %1907 = vmatmul.f32.gmra.mxu1 %v3389_v7 }
 0x26c   : > { %v1450_v60 = vpop.f32.mrf.mxu2 }
 0x26d   : > { %v1451_v61 = vadd.f32 %v1450_v60, %v3958_v63 }
 0x26e   : > { %v1518_v22 = vpop.f32.mrf.mxu3  ;;  %v1583_v62 = vpop.f32.mrf.mxu0 }
 0x26f   : > { %v2490_v20 = vpop.eup %2489  ;;  %v1516_v3 = vadd.f32 %v1515_v34, %v1451_v61  ;;  %v1584_v27 = vadd.f32 %v1583_v62, %v3950_v8 }
 0x270   : > { %2219 = vst [vmem:[%s3643_s13 + $0x160] sm:$0xff] %v2490_v20  ;;  %v1651_v4 = vpop.f32.mrf.mxu1  ;;  %v932_v20 = vld [vmem:[%s4329_s5 + $0xa0] sm:$0xff] }
 0x271   : > { %v2492_v6 = vpop.eup %2491  ;;  %2493 = vtanh.f32 %v1516_v3  ;;  %v1649_v10 = vadd.f32 %v1648_v44, %v1584_v27  ;;  %1712 = vmatmul.f32.gmra.mxu2 %v3409_v21  ;;  %1842 = vmatmul.f32.gmra.mxu0 %v3409_v21  ;;  %v1044_v3 = vld [vmem:[%s4329_s5 + $0x420] sm:$0xff] }
 0x272   : > { %2227 = vst [vmem:[%s3643_s13 + $0x1a0] sm:$0xff] %v2492_v6  ;;  %1945 = vmatpush.msra.mxu2 %v932_v20  ;;  %2010 = vmatpush.msra.mxu3 %v1044_v3 }
 0x273   : > { %2495 = vtanh.f32 %v1649_v10  ;;  %1780 = vmatmul.f32.gmra.mxu3 %v3414_v24  ;;  %1910 = vmatmul.f32.gmra.mxu1 %v3414_v24 }
 0x274   : > { %v1453_v17 = vpop.f32.mrf.mxu2 }
 0x275   : > { %v1454_v19 = vadd.f32 %v1453_v17, %v3958_v63 }
 0x276   : > { %v1521_v47 = vpop.f32.mrf.mxu3  ;;  %v1586_v48 = vpop.f32.mrf.mxu0 }
 0x277   : > { %v2494_v26 = vpop.eup %2493  ;;  %v1519_v29 = vadd.f32 %v1518_v22, %v1454_v19  ;;  %v1587_v31 = vadd.f32 %v1586_v48, %v3950_v8  ;;  %v1037_v19 = vld [vmem:[%s4329_s5 + $0x3e8] sm:$0xff] }
 0x278   : > { %2226 = vst [vmem:[%s3643_s13 + $0x198] sm:$0xff] %v2494_v26  ;;  %v1654_v33 = vpop.f32.mrf.mxu1  ;;  %2011 = vmatpush.msra.mxu3 %v1037_v19 }
 0x279   : > { %v2496_v34 = vpop.eup %2495  ;;  %2497 = vtanh.f32 %v1519_v29  ;;  %v1652_v35 = vadd.f32 %v1651_v4, %v1587_v31  ;;  %1715 = vmatmul.f32.gmra.mxu2 %v3446_v49  ;;  %1845 = vmatmul.f32.gmra.mxu0 %v3446_v49  ;;  %v1030_v29 = vld [vmem:[%s4329_s5 + $0x3b0] sm:$0xff]  ;;  %v925_v31 = vld [vmem:[%s4329_s5 + $0x68] sm:$0xff] }
 0x27a   : > { %2234 = vst [vmem:[%s3643_s13 + $0x1d8] sm:$0xff] %v2496_v34  ;;  %2012 = vmatpush.msra.mxu3 %v1030_v29  ;;  %1946 = vmatpush.msra.mxu2 %v925_v31 }
 0x27b   : > { %2499 = vtanh.f32 %v1652_v35  ;;  %1783 = vmatmul.f32.gmra.mxu3 %v3454_v56  ;;  %1913 = vmatmul.f32.gmra.mxu1 %v3454_v56 }
 0x27c   : > { %v1456_v43 = vpop.f32.mrf.mxu2 }
 0x27d   : > { %v1457_v44 = vadd.f32 %v1456_v43, %v3958_v63 }
 0x27e   : > { %v1524_v45 = vpop.f32.mrf.mxu3  ;;  %v1589_v50 = vpop.f32.mrf.mxu0 }
 0x27f   : > { %v2498_v53 = vpop.eup %2497  ;;  %v1522_v59 = vadd.f32 %v1521_v47, %v1457_v44  ;;  %v1590_v60 = vadd.f32 %v1589_v50, %v3950_v8 }
 0x280   : > { %2233 = vst [vmem:[%s3643_s13 + $0x1d0] sm:$0xff] %v2498_v53  ;;  %v1657_v61 = vpop.f32.mrf.mxu1 }
 0x281   : > { %v2500_v22 = vpop.eup %2499  ;;  %2501 = vtanh.f32 %v1522_v59  ;;  %v1655_v62 = vadd.f32 %v1654_v33, %v1590_v60  ;;  %1718 = vmatmul.f32.gmra.mxu2 %v3483_v13  ;;  %1848 = vmatmul.f32.gmra.mxu0 %v3483_v13 }
 0x282   : > { %2241 = vst [vmem:[%s3643_s13 + $0x210] sm:$0xff] %v2500_v22 }
 0x283   : > { %2503 = vtanh.f32 %v1655_v62  ;;  %1786 = vmatmul.f32.gmra.mxu3 %v3491_v18  ;;  %1916 = vmatmul.f32.gmra.mxu1 %v3491_v18 }
 0x284   : > { %v1459_v27 = vpop.f32.mrf.mxu2 }
 0x285   : > { %v1460_v4 = vadd.f32 %v1459_v27, %v3958_v63 }
 0x286   : > { %v1527_v6 = vpop.f32.mrf.mxu3  ;;  %v1592_v10 = vpop.f32.mrf.mxu0 }
 0x287   : > { %v2502_v11 = vpop.eup %2501  ;;  %v1525_v16 = vadd.f32 %v1524_v45, %v1460_v4  ;;  %v1593_v17 = vadd.f32 %v1592_v10, %v3950_v8  ;;  %v918_v45 = vld [vmem:[%s4329_s5 + $0x30] sm:$0xff] }
 0x288   : > { %2240 = vst [vmem:[%s3643_s13 + $0x208] sm:$0xff] %v2502_v11  ;;  %v1660_v47 = vpop.f32.mrf.mxu1  ;;  %1947 = vmatpush.msra.mxu2 %v918_v45 }
 0x289   : > { %v2504_v48 = vpop.eup %2503  ;;  %2505 = vtanh.f32 %v1525_v16  ;;  %v1658_v26 = vadd.f32 %v1657_v61, %v1593_v17  ;;  %1721 = vmatmul.f32.gmra.mxu2 %v3520_v42  ;;  %1851 = vmatmul.f32.gmra.mxu0 %v3520_v42 }
 0x28a   : > { %2248 = vst [vmem:[%s3643_s13 + $0x248] sm:$0xff] %v2504_v48 }
 0x28b   : > { %2507 = vtanh.f32 %v1658_v26  ;;  %1789 = vmatmul.f32.gmra.mxu3 %v3528_v46  ;;  %1919 = vmatmul.f32.gmra.mxu1 %v3528_v46 }
 0x28c   : > { %v1462_v33 = vpop.f32.mrf.mxu2 }
 0x28d   : > { %v1463_v34 = vadd.f32 %v1462_v33, %v3958_v63 }
 0x28e   : > { %v1530_v35 = vpop.f32.mrf.mxu3  ;;  %v1595_v36 = vpop.f32.mrf.mxu0 }
 0x28f   : > { %v2506_v39 = vpop.eup %2505  ;;  %v1528_v43 = vadd.f32 %v1527_v6, %v1463_v34  ;;  %v1596_v44 = vadd.f32 %v1595_v36, %v3950_v8 }
 0x290   : > { %2247 = vst [vmem:[%s3643_s13 + $0x240] sm:$0xff] %v2506_v39  ;;  %v1663_v50 = vpop.f32.mrf.mxu1 }
 0x291   : > { %v2508_v53 = vpop.eup %2507  ;;  %2509 = vtanh.f32 %v1528_v43  ;;  %v1661_v59 = vadd.f32 %v1660_v47, %v1596_v44  ;;  %1724 = vmatmul.f32.gmra.mxu2 %v3557_v9  ;;  %1854 = vmatmul.f32.gmra.mxu0 %v3557_v9 }
 0x292   : > { %2255 = vst [vmem:[%s3643_s13 + $0x280] sm:$0xff] %v2508_v53 }
 0x293   : > { %2511 = vtanh.f32 %v1661_v59  ;;  %1792 = vmatmul.f32.gmra.mxu3 %v3562_v15  ;;  %1922 = vmatmul.f32.gmra.mxu1 %v3562_v15 }
 0x294   : > { %v1465_v60 = vpop.f32.mrf.mxu2 }
 0x295   : > { %v1466_v61 = vadd.f32 %v1465_v60, %v3958_v63  ;;  %v4163_v60 = vld [vmem:[%s4330_s6] sm:$0x7f] }
 0x296   : > { %v1533_v22 = vpop.f32.mrf.mxu3  ;;  %v1598_v62 = vpop.f32.mrf.mxu0 }
 0x297   : > { %v2510_v20 = vpop.eup %2509  ;;  %v1531_v3 = vadd.f32 %v1530_v35, %v1466_v61  ;;  %v1599_v27 = vadd.f32 %v1598_v62, %v3950_v8 }
 0x298   : > { %2254 = vst [vmem:[%s3643_s13 + $0x278] sm:$0xff] %v2510_v20  ;;  %v1666_v4 = vpop.f32.mrf.mxu1 }
 0x299   : > { %v2512_v6 = vpop.eup %2511  ;;  %2513 = vtanh.f32 %v1531_v3  ;;  %v1664_v10 = vadd.f32 %v1663_v50, %v1599_v27  ;;  %1727 = vmatmul.f32.gmra.mxu2 %v3573_v30  ;;  %1857 = vmatmul.f32.gmra.mxu0 %v3573_v30 }
 0x29a   : > { %2262 = vst [vmem:[%s3643_s13 + $0x2b8] sm:$0xff] %v2512_v6 }
 0x29b   : > { %2515 = vtanh.f32 %v1664_v10  ;;  %1795 = vmatmul.f32.gmra.mxu3 %v3575_v32  ;;  %1925 = vmatmul.f32.gmra.mxu1 %v3575_v32 }
 0x29c   : > { %v1468_v11 = vpop.f32.mrf.mxu2 }
 0x29d   : > { %v1469_v16 = vadd.f32 %v1468_v11, %v3958_v63  ;;  %v4173_v11 = vperm.slane %v4163_v60, 4 }
 0x29e   : > { %v1536_v17 = vpop.f32.mrf.mxu3  ;;  %v1601_v19 = vpop.f32.mrf.mxu0 }
 0x29f   : > { %v2514_v47 = vpop.eup %2513  ;;  %v1534_v48 = vadd.f32 %v1533_v22, %v1469_v16  ;;  %v1602_v26 = vadd.f32 %v1601_v19, %v3950_v8 }
 0x2a0   : > { %2261 = vst [vmem:[%s3643_s13 + $0x2b0] sm:$0xff] %v2514_v47  ;;  %v1669_v29 = vpop.f32.mrf.mxu1 }
 0x2a1   : > { %v2516_v31 = vpop.eup %2515  ;;  %2517 = vtanh.f32 %v1534_v48  ;;  %v1667_v33 = vadd.f32 %v1666_v4, %v1602_v26  ;;  %1730 = vmatmul.f32.gmra.mxu2 %v3589_v51  ;;  %1860 = vmatmul.f32.gmra.mxu0 %v3589_v51 }
 0x2a2   : > { %2269 = vst [vmem:[%s3643_s13 + $0x2f0] sm:$0xff] %v2516_v31 }
 0x2a3   : > { %2519 = vtanh.f32 %v1667_v33  ;;  %1798 = vmatmul.f32.gmra.mxu3 %v3591_v58  ;;  %1928 = vmatmul.f32.gmra.mxu1 %v3591_v58 }
 0x2a4   : > { %v1471_v34 = vpop.f32.mrf.mxu2 }
 0x2a5   : > { %v1472_v35 = vadd.f32 %v1471_v34, %v3958_v63 }
 0x2a6   : > { %v1539_v36 = vpop.f32.mrf.mxu3  ;;  %v1604_v39 = vpop.f32.mrf.mxu0 }
 0x2a7   : > { %v2518_v43 = vpop.eup %2517  ;;  %v1537_v44 = vadd.f32 %v1536_v17, %v1472_v35  ;;  %v1605_v45 = vadd.f32 %v1604_v39, %v3950_v8  ;;  %v4166_v8 = vperm.slane %v4163_v60, 5 }
 0x2a8   : > { %2268 = vst [vmem:[%s3643_s13 + $0x2e8] sm:$0xff] %v2518_v43  ;;  %v1884_v50 = vpop.f32.mrf.mxu1 }
 0x2a9   : > { %v2520_v53 = vpop.eup %2519  ;;  %2521 = vtanh.f32 %v1537_v44  ;;  %v1670_v59 = vadd.f32 %v1669_v29, %v1605_v45  ;;  %1733 = vmatmul.f32.gmra.mxu2 %v3604_v1  ;;  %1863 = vmatmul.f32.gmra.mxu0 %v3604_v1 }
 0x2aa   : > { %2276 = vst [vmem:[%s3643_s13 + $0x328] sm:$0xff] %v2520_v53 }
 0x2ab   : > { %2523 = vtanh.f32 %v1670_v59  ;;  %2013 = vmatmul.f32.vlgmr.msra.gmra.mxu3 %v3263_v28 }
 0x2ac   : > { %v1474_v61 = vpop.f32.mrf.mxu2 }
 0x2ad   : > { %v1475_v22 = vadd.f32 %v1474_v61, %v3958_v63 }
 0x2ae   : > { %v1754_v62 = vpop.f32.mrf.mxu3  ;;  %v1819_v20 = vpop.f32.mrf.mxu0 }
 0x2af   : > { %v2522_v3 = vpop.eup %2521  ;;  %v1540_v27 = vadd.f32 %v1539_v36, %v1475_v22  ;;  %v1820_v4 = vadd.f32 %v1819_v20, %v4166_v8 }
 0x2b0   : > { %2275 = vst [vmem:[%s3643_s13 + $0x320] sm:$0xff] %v2522_v3  ;;  %v1887_v28 = vpop.f32.mrf.mxu1 }
 0x2b1   : > { %v2524_v6 = vpop.eup %2523  ;;  %2525 = vtanh.f32 %v1540_v27  ;;  %v1885_v10 = vadd.f32 %v1884_v50, %v1820_v4  ;;  %1948 = vmatmul.f32.vlgmr.msra.gmra.mxu2 %v3275_v38 }
 0x2b2   : > { %2283 = vst [vmem:[%s3643_s13 + $0x360] sm:$0xff] %v2524_v6 }
 0x2b3   : > { %2527 = vtanh.f32 %v1885_v10  ;;  %2016 = vmatmul.f32.gmra.mxu3 %v3277_v40 }
 0x2b4   : > { %v1689_v63 = vpop.f32.mrf.mxu2 }
 0x2b5   : > { %v1690_v16 = vadd.f32 %v1689_v63, %v4173_v11 }
 0x2b6   : > { %v1757_v17 = vpop.f32.mrf.mxu3  ;;  %v1822_v19 = vpop.f32.mrf.mxu0 }
 0x2b7   : > { %v2526_v47 = vpop.eup %2525  ;;  %v1755_v48 = vadd.f32 %v1754_v62, %v1690_v16  ;;  %v1823_v26 = vadd.f32 %v1822_v19, %v4166_v8 }
 0x2b8   : > { %2282 = vst [vmem:[%s3643_s13 + $0x358] sm:$0xff] %v2526_v47  ;;  %v1890_v38 = vpop.f32.mrf.mxu1 }
 0x2b9   : > { %v2528_v29 = vpop.eup %2527  ;;  %2529 = vtanh.f32 %v1755_v48  ;;  %v1888_v31 = vadd.f32 %v1887_v28, %v1823_v26  ;;  %1951 = vmatmul.f32.gmra.mxu2 %v3291_v52 }
 0x2ba   : > { %2179 = vst [vmem:[%s3643_s13 + $0x28] sm:$0xff] %v2528_v29 }
 0x2bb   : > { %2531 = vtanh.f32 %v1888_v31  ;;  %2019 = vmatmul.f32.gmra.mxu3 %v3293_v54 }
 0x2bc   : > { %v1692_v40 = vpop.f32.mrf.mxu2 }
 0x2bd   : > { %v1693_v33 = vadd.f32 %v1692_v40, %v4173_v11 }
 0x2be   : > { %v1760_v34 = vpop.f32.mrf.mxu3  ;;  %v1825_v35 = vpop.f32.mrf.mxu0 }
 0x2bf   : > { %v2530_v36 = vpop.eup %2529  ;;  %v1758_v39 = vadd.f32 %v1757_v17, %v1693_v33  ;;  %v1826_v43 = vadd.f32 %v1825_v35, %v4166_v8 }
 0x2c0   : > { %2178 = vst [vmem:[%s3643_s13 + $0x20] sm:$0xff] %v2530_v36  ;;  %v1893_v44 = vpop.f32.mrf.mxu1 }
 0x2c1   : > { %v2532_v45 = vpop.eup %2531  ;;  %2533 = vtanh.f32 %v1758_v39  ;;  %v1891_v52 = vadd.f32 %v1890_v38, %v1826_v43  ;;  %1954 = vmatmul.f32.gmra.mxu2 %v3307_v0 }
 0x2c2   : > { %2187 = vst [vmem:[%s3643_s13 + $0x60] sm:$0xff] %v2532_v45 }
 0x2c3   : > { %2535 = vtanh.f32 %v1891_v52  ;;  %2022 = vmatmul.f32.gmra.mxu3 %v3309_v2 }
 0x2c4   : > { %v1695_v54 = vpop.f32.mrf.mxu2 }
 0x2c5   : > { %v1696_v50 = vadd.f32 %v1695_v54, %v4173_v11 }
 0x2c6   : > { %v1763_v53 = vpop.f32.mrf.mxu3  ;;  %v1828_v59 = vpop.f32.mrf.mxu0 }
 0x2c7   : > { %v2534_v61 = vpop.eup %2533  ;;  %v1761_v22 = vadd.f32 %v1760_v34, %v1696_v50  ;;  %v1829_v62 = vadd.f32 %v1828_v59, %v4166_v8 }
 0x2c8   : > { %2186 = vst [vmem:[%s3643_s13 + $0x58] sm:$0xff] %v2534_v61  ;;  %v1896_v20 = vpop.f32.mrf.mxu1 }
 0x2c9   : > { %v2536_v3 = vpop.eup %2535  ;;  %2537 = vtanh.f32 %v1761_v22  ;;  %v1894_v0 = vadd.f32 %v1893_v44, %v1829_v62  ;;  %1957 = vmatmul.f32.gmra.mxu2 %v3323_v12 }
 0x2ca   : > { %2194 = vst [vmem:[%s3643_s13 + $0x98] sm:$0xff] %v2536_v3 }
 0x2cb   : > { %2539 = vtanh.f32 %v1894_v0  ;;  %2025 = vmatmul.f32.gmra.mxu3 %v3325_v14 }
 0x2cc   : > { %v1698_v2 = vpop.f32.mrf.mxu2 }
 0x2cd   : > { %v1699_v27 = vadd.f32 %v1698_v2, %v4173_v11 }
 0x2ce   : > { %v1766_v4 = vpop.f32.mrf.mxu3  ;;  %v1831_v28 = vpop.f32.mrf.mxu0 }
 0x2cf   : > { %v2538_v6 = vpop.eup %2537  ;;  %v1764_v10 = vadd.f32 %v1763_v53, %v1699_v27  ;;  %v1832_v63 = vadd.f32 %v1831_v28, %v4166_v8 }
 0x2d0   : > { %2193 = vst [vmem:[%s3643_s13 + $0x90] sm:$0xff] %v2538_v6  ;;  %v1899_v16 = vpop.f32.mrf.mxu1 }
 0x2d1   : > { %v2540_v17 = vpop.eup %2539  ;;  %2541 = vtanh.f32 %v1764_v10  ;;  %v1897_v12 = vadd.f32 %v1896_v20, %v1832_v63  ;;  %1960 = vmatmul.f32.gmra.mxu2 %v3339_v23 }
 0x2d2   : > { %2201 = vst [vmem:[%s3643_s13 + $0xd0] sm:$0xff] %v2540_v17 }
 0x2d3   : > { %2543 = vtanh.f32 %v1897_v12  ;;  %2028 = vmatmul.f32.gmra.mxu3 %v3341_v25 }
 0x2d4   : > { %v1701_v14 = vpop.f32.mrf.mxu2 }
 0x2d5   : > { %v1702_v19 = vadd.f32 %v1701_v14, %v4173_v11 }
 0x2d6   : > { %v1769_v47 = vpop.f32.mrf.mxu3  ;;  %v1834_v48 = vpop.f32.mrf.mxu0 }
 0x2d7   : > { %v2542_v26 = vpop.eup %2541  ;;  %v1767_v38 = vadd.f32 %v1766_v4, %v1702_v19  ;;  %v1835_v29 = vadd.f32 %v1834_v48, %v4166_v8 }
 0x2d8   : > { %2200 = vst [vmem:[%s3643_s13 + $0xc8] sm:$0xff] %v2542_v26  ;;  %v1902_v31 = vpop.f32.mrf.mxu1 }
 0x2d9   : > { %v2544_v40 = vpop.eup %2543  ;;  %2545 = vtanh.f32 %v1767_v38  ;;  %v1900_v23 = vadd.f32 %v1899_v16, %v1835_v29  ;;  %1963 = vmatmul.f32.gmra.mxu2 %v3355_v37 }
 0x2da   : > { %2208 = vst [vmem:[%s3643_s13 + $0x108] sm:$0xff] %v2544_v40 }
 0x2db   : > { %2547 = vtanh.f32 %v1900_v23  ;;  %2031 = vmatmul.f32.gmra.mxu3 %v3357_v41 }
 0x2dc   : > { %v1704_v25 = vpop.f32.mrf.mxu2 }
 0x2dd   : > { %v1705_v33 = vadd.f32 %v1704_v25, %v4173_v11 }
 0x2de   : > { %v1772_v34 = vpop.f32.mrf.mxu3  ;;  %v1837_v35 = vpop.f32.mrf.mxu0 }
 0x2df   : > { %v2546_v36 = vpop.eup %2545  ;;  %v1770_v39 = vadd.f32 %v1769_v47, %v1705_v33  ;;  %v1838_v43 = vadd.f32 %v1837_v35, %v4166_v8 }
 0x2e0   : > { %2207 = vst [vmem:[%s3643_s13 + $0x100] sm:$0xff] %v2546_v36  ;;  %v1905_v44 = vpop.f32.mrf.mxu1 }
 0x2e1   : > { %v2548_v45 = vpop.eup %2547  ;;  %2549 = vtanh.f32 %v1770_v39  ;;  %v1903_v37 = vadd.f32 %v1902_v31, %v1838_v43  ;;  %1966 = vmatmul.f32.gmra.mxu2 %v3371_v55 }
 0x2e2   : > { %2215 = vst [vmem:[%s3643_s13 + $0x140] sm:$0xff] %v2548_v45 }
 0x2e3   : > { %2551 = vtanh.f32 %v1903_v37  ;;  %2034 = vmatmul.f32.gmra.mxu3 %v3373_v57 }
 0x2e4   : > { %v1707_v41 = vpop.f32.mrf.mxu2 }
 0x2e5   : > { %v1708_v52 = vadd.f32 %v1707_v41, %v4173_v11 }
 0x2e6   : > { %v1775_v54 = vpop.f32.mrf.mxu3  ;;  %v1840_v50 = vpop.f32.mrf.mxu0 }
 0x2e7   : > { %v2550_v53 = vpop.eup %2549  ;;  %v1773_v59 = vadd.f32 %v1772_v34, %v1708_v52  ;;  %v1841_v61 = vadd.f32 %v1840_v50, %v4166_v8 }
 0x2e8   : > { %2214 = vst [vmem:[%s3643_s13 + $0x138] sm:$0xff] %v2550_v53  ;;  %v1908_v22 = vpop.f32.mrf.mxu1 }
 0x2e9   : > { %v2552_v62 = vpop.eup %2551  ;;  %2553 = vtanh.f32 %v1773_v59  ;;  %v1906_v55 = vadd.f32 %v1905_v44, %v1841_v61  ;;  %1969 = vmatmul.f32.gmra.mxu2 %v3387_v5 }
 0x2ea   : > { %2222 = vst [vmem:[%s3643_s13 + $0x178] sm:$0xff] %v2552_v62 }
 0x2eb   : > { %2555 = vtanh.f32 %v1906_v55  ;;  %2037 = vmatmul.f32.gmra.mxu3 %v3389_v7 }
 0x2ec   : > { %v1710_v57 = vpop.f32.mrf.mxu2 }
 0x2ed   : > { %v1711_v20 = vadd.f32 %v1710_v57, %v4173_v11 }
 0x2ee   : > { %v1778_v3 = vpop.f32.mrf.mxu3  ;;  %v1843_v0 = vpop.f32.mrf.mxu0 }
 0x2ef   : > { %v2554_v2 = vpop.eup %2553  ;;  %v1776_v27 = vadd.f32 %v1775_v54, %v1711_v20  ;;  %v1844_v4 = vadd.f32 %v1843_v0, %v4166_v8 }
 0x2f0   : > { %2221 = vst [vmem:[%s3643_s13 + $0x170] sm:$0xff] %v2554_v2  ;;  %v1911_v28 = vpop.f32.mrf.mxu1 }
 0x2f1   : > { %v2556_v6 = vpop.eup %2555  ;;  %2557 = vtanh.f32 %v1776_v27  ;;  %v1909_v5 = vadd.f32 %v1908_v22, %v1844_v4  ;;  %1972 = vmatmul.f32.gmra.mxu2 %v3409_v21 }
 0x2f2   : > { %2229 = vst [vmem:[%s3643_s13 + $0x1b0] sm:$0xff] %v2556_v6 }
 0x2f3   : > { %2559 = vtanh.f32 %v1909_v5  ;;  %2040 = vmatmul.f32.gmra.mxu3 %v3414_v24 }
 0x2f4   : > { %v1713_v7 = vpop.f32.mrf.mxu2 }
 0x2f5   : > { %v1714_v10 = vadd.f32 %v1713_v7, %v4173_v11 }
 0x2f6   : > { %v1781_v63 = vpop.f32.mrf.mxu3  ;;  %v1846_v16 = vpop.f32.mrf.mxu0 }
 0x2f7   : > { %v2558_v17 = vpop.eup %2557  ;;  %v1779_v12 = vadd.f32 %v1778_v3, %v1714_v10  ;;  %v1847_v14 = vadd.f32 %v1846_v16, %v4166_v8 }
 0x2f8   : > { %2228 = vst [vmem:[%s3643_s13 + $0x1a8] sm:$0xff] %v2558_v17  ;;  %v1914_v19 = vpop.f32.mrf.mxu1 }
 0x2f9   : > { %v2560_v47 = vpop.eup %2559  ;;  %2561 = vtanh.f32 %v1779_v12  ;;  %v1912_v21 = vadd.f32 %v1911_v28, %v1847_v14  ;;  %1975 = vmatmul.f32.gmra.mxu2 %v3446_v49 }
 0x2fa   : > { %2236 = vst [vmem:[%s3643_s13 + $0x1e8] sm:$0xff] %v2560_v47 }
 0x2fb   : > { %2563 = vtanh.f32 %v1912_v21  ;;  %2043 = vmatmul.f32.gmra.mxu3 %v3454_v56 }
 0x2fc   : > { %v1716_v24 = vpop.f32.mrf.mxu2 }
 0x2fd   : > { %v1717_v48 = vadd.f32 %v1716_v24, %v4173_v11 }
 0x2fe   : > { %v1784_v26 = vpop.f32.mrf.mxu3  ;;  %v1849_v38 = vpop.f32.mrf.mxu0 }
 0x2ff   : > { %v2562_v29 = vpop.eup %2561  ;;  %v1782_v31 = vadd.f32 %v1781_v63, %v1717_v48  ;;  %v1850_v40 = vadd.f32 %v1849_v38, %v4166_v8 }
 0x300   : > { %2235 = vst [vmem:[%s3643_s13 + $0x1e0] sm:$0xff] %v2562_v29  ;;  %v1917_v23 = vpop.f32.mrf.mxu1 }
 0x301   : > { %v2564_v25 = vpop.eup %2563  ;;  %2565 = vtanh.f32 %v1782_v31  ;;  %v1915_v49 = vadd.f32 %v1914_v19, %v1850_v40  ;;  %1978 = vmatmul.f32.gmra.mxu2 %v3483_v13 }
 0x302   : > { %2243 = vst [vmem:[%s3643_s13 + $0x220] sm:$0xff] %v2564_v25 }
 0x303   : > { %2567 = vtanh.f32 %v1915_v49  ;;  %2046 = vmatmul.f32.gmra.mxu3 %v3491_v18 }
 0x304   : > { %v1719_v56 = vpop.f32.mrf.mxu2 }
 0x305   : > { %v1720_v33 = vadd.f32 %v1719_v56, %v4173_v11 }
 0x306   : > { %v1787_v34 = vpop.f32.mrf.mxu3  ;;  %v1852_v35 = vpop.f32.mrf.mxu0 }
 0x307   : > { %v2566_v36 = vpop.eup %2565  ;;  %v1785_v39 = vadd.f32 %v1784_v26, %v1720_v33  ;;  %v1853_v43 = vadd.f32 %v1852_v35, %v4166_v8 }
 0x308   : > { %2242 = vst [vmem:[%s3643_s13 + $0x218] sm:$0xff] %v2566_v36  ;;  %v1920_v13 = vpop.f32.mrf.mxu1 }
 0x309   : > { %v2568_v44 = vpop.eup %2567  ;;  %2569 = vtanh.f32 %v1785_v39  ;;  %v1918_v45 = vadd.f32 %v1917_v23, %v1853_v43  ;;  %1981 = vmatmul.f32.gmra.mxu2 %v3520_v42 }
 0x30a   : > { %2250 = vst [vmem:[%s3643_s13 + $0x258] sm:$0xff] %v2568_v44 }
 0x30b   : > { %2571 = vtanh.f32 %v1918_v45  ;;  %2049 = vmatmul.f32.gmra.mxu3 %v3528_v46 }
 0x30c   : > { %v1722_v18 = vpop.f32.mrf.mxu2 }
 0x30d   : > { %v1723_v37 = vadd.f32 %v1722_v18, %v4173_v11 }
 0x30e   : > { %v1790_v41 = vpop.f32.mrf.mxu3  ;;  %v1855_v52 = vpop.f32.mrf.mxu0 }
 0x30f   : > { %v2570_v54 = vpop.eup %2569  ;;  %v1788_v50 = vadd.f32 %v1787_v34, %v1723_v37  ;;  %v1856_v53 = vadd.f32 %v1855_v52, %v4166_v8 }
 0x310   : > { %2249 = vst [vmem:[%s3643_s13 + $0x250] sm:$0xff] %v2570_v54  ;;  %v1923_v42 = vpop.f32.mrf.mxu1 }
 0x311   : > { %v2572_v59 = vpop.eup %2571  ;;  %2573 = vtanh.f32 %v1788_v50  ;;  %v1921_v61 = vadd.f32 %v1920_v13, %v1856_v53  ;;  %1984 = vmatmul.f32.gmra.mxu2 %v3557_v9 }
 0x312   : > { %2257 = vst [vmem:[%s3643_s13 + $0x290] sm:$0xff] %v2572_v59 }
 0x313   : > { %2575 = vtanh.f32 %v1921_v61  ;;  %2052 = vmatmul.f32.gmra.mxu3 %v3562_v15 }
 0x314   : > { %v1725_v46 = vpop.f32.mrf.mxu2 }
 0x315   : > { %v1726_v22 = vadd.f32 %v1725_v46, %v4173_v11 }
 0x316   : > { %v1793_v62 = vpop.f32.mrf.mxu3  ;;  %v1858_v55 = vpop.f32.mrf.mxu0 }
 0x317   : > { %v2574_v57 = vpop.eup %2573  ;;  %v1791_v20 = vadd.f32 %v1790_v41, %v1726_v22  ;;  %v1859_v3 = vadd.f32 %v1858_v55, %v4166_v8 }
 0x318   : > { %2256 = vst [vmem:[%s3643_s13 + $0x288] sm:$0xff] %v2574_v57  ;;  %v1926_v2 = vpop.f32.mrf.mxu1 }
 0x319   : > { %v2576_v0 = vpop.eup %2575  ;;  %2577 = vtanh.f32 %v1791_v20  ;;  %v1924_v9 = vadd.f32 %v1923_v42, %v1859_v3  ;;  %1987 = vmatmul.f32.gmra.mxu2 %v3573_v30 }
 0x31a   : > { %2264 = vst [vmem:[%s3643_s13 + $0x2c8] sm:$0xff] %v2576_v0 }
 0x31b   : > { %2579 = vtanh.f32 %v1924_v9  ;;  %2055 = vmatmul.f32.gmra.mxu3 %v3575_v32 }
 0x31c   : > { %v1728_v15 = vpop.f32.mrf.mxu2 }
 0x31d   : > { %v1729_v27 = vadd.f32 %v1728_v15, %v4173_v11 }
 0x31e   : > { %v1796_v4 = vpop.f32.mrf.mxu3  ;;  %v1861_v28 = vpop.f32.mrf.mxu0 }
 0x31f   : > { %v2578_v6 = vpop.eup %2577  ;;  %v1794_v5 = vadd.f32 %v1793_v62, %v1729_v27  ;;  %v1862_v7 = vadd.f32 %v1861_v28, %v4166_v8 }
 0x320   : > { %2263 = vst [vmem:[%s3643_s13 + $0x2c0] sm:$0xff] %v2578_v6  ;;  %v1929_v47 = vpop.f32.mrf.mxu1 }
 0x321   : > { %v2580_v10 = vpop.eup %2579  ;;  %2581 = vtanh.f32 %v1794_v5  ;;  %v1927_v30 = vadd.f32 %v1926_v2, %v1862_v7  ;;  %1990 = vmatmul.f32.gmra.mxu2 %v3589_v51 }
 0x322   : > { %2271 = vst [vmem:[%s3643_s13 + $0x300] sm:$0xff] %v2580_v10 }
 0x323   : > { %2583 = vtanh.f32 %v1927_v30  ;;  %2058 = vmatmul.f32.gmra.mxu3 %v3591_v58 }
 0x324   : > { %v1731_v32 = vpop.f32.mrf.mxu2 }
 0x325   : > { %v1732_v63 = vadd.f32 %v1731_v32, %v4173_v11 }
 0x326   : > { %v1799_v16 = vpop.f32.mrf.mxu3  ;;  %v1864_v17 = vpop.f32.mrf.mxu0 }
 0x327   : > { %v2582_v12 = vpop.eup %2581  ;;  %v1797_v14 = vadd.f32 %v1796_v4, %v1732_v63  ;;  %v1865_v19 = vadd.f32 %v1864_v17, %v4166_v8  ;;  %v4269_v8 = vperm.slane %v4163_v60, 6 }
 0x328   : > { %2270 = vst [vmem:[%s3643_s13 + $0x2f8] sm:$0xff] %v2582_v12 }
 0x329   : > { %v2584_v21 = vpop.eup %2583  ;;  %2585 = vtanh.f32 %v1797_v14  ;;  %v1930_v51 = vadd.f32 %v1929_v47, %v1865_v19  ;;  %1993 = vmatmul.f32.gmra.mxu2 %v3604_v1 }
 0x32a   : > { %2278 = vst [vmem:[%s3643_s13 + $0x338] sm:$0xff] %v2584_v21 }
 0x32b   : > { %2587 = vtanh.f32 %v1930_v51 }
 0x32c   : > { %v1734_v58 = vpop.f32.mrf.mxu2 }
 0x32d   : > { %v1735_v24 = vadd.f32 %v1734_v58, %v4173_v11 }
 0x32e   : > { %v2014_v48 = vpop.f32.mrf.mxu3 }
 0x32f   : > { %v2586_v26 = vpop.eup %2585  ;;  %v1800_v38 = vadd.f32 %v1799_v16, %v1735_v24 }
 0x330   : > { %2277 = vst [vmem:[%s3643_s13 + $0x330] sm:$0xff] %v2586_v26 }
 0x331   : > { %v2588_v29 = vpop.eup %2587  ;;  %2589 = vtanh.f32 %v1800_v38 }
 0x332   : > { %2285 = vst [vmem:[%s3643_s13 + $0x370] sm:$0xff] %v2588_v29 }
 0x334   : > { %v1949_v31 = vpop.f32.mrf.mxu2 }
 0x335   : > { %v1950_v1 = vadd.f32 %v1949_v31, %v4269_v8 }
 0x336   : > { %v2017_v40 = vpop.f32.mrf.mxu3 }
 0x337   : > { %v2590_v23 = vpop.eup %2589  ;;  %v2015_v25 = vadd.f32 %v2014_v48, %v1950_v1 }
 0x338   : > { %2284 = vst [vmem:[%s3643_s13 + $0x368] sm:$0xff] %v2590_v23 }
 0x339   : > { %2591 = vtanh.f32 %v2015_v25 }
 0x33c   : > { %v1952_v11 = vpop.f32.mrf.mxu2 }
 0x33d   : > { %v1953_v49 = vadd.f32 %v1952_v11, %v4269_v8 }
 0x33e   : > { %v2020_v56 = vpop.f32.mrf.mxu3 }
 0x33f   : > { %v2592_v33 = vpop.eup %2591  ;;  %v2018_v34 = vadd.f32 %v2017_v40, %v1953_v49 }
 0x340   : > { %2181 = vst.msk [vmem:[%s3643_s13 + $0x30] sm:$0xff] %vm2180_vm2, %v2592_v33 }
 0x341   : > { %2593 = vtanh.f32 %v2018_v34 }
 0x344   : > { %v1955_v60 = vpop.f32.mrf.mxu2 }
 0x345   : > { %v1956_v35 = vadd.f32 %v1955_v60, %v4269_v8 }
 0x346   : > { %v2023_v36 = vpop.f32.mrf.mxu3 }
 0x347   : > { %v2594_v39 = vpop.eup %2593  ;;  %v2021_v43 = vadd.f32 %v2020_v56, %v1956_v35 }
 0x348   : > { %2188 = vst.msk [vmem:[%s3643_s13 + $0x68] sm:$0xff] %vm2180_vm2, %v2594_v39 }
 0x349   : > { %2595 = vtanh.f32 %v2021_v43 }
 0x34c   : > { %v1958_v44 = vpop.f32.mrf.mxu2 }
 0x34d   : > { %v1959_v45 = vadd.f32 %v1958_v44, %v4269_v8 }
 0x34e   : > { %v2026_v13 = vpop.f32.mrf.mxu3 }
 0x34f   : > { %v2596_v18 = vpop.eup %2595  ;;  %v2024_v37 = vadd.f32 %v2023_v36, %v1959_v45 }
 0x350   : > { %2195 = vst.msk [vmem:[%s3643_s13 + $0xa0] sm:$0xff] %vm2180_vm2, %v2596_v18 }
 0x351   : > { %2597 = vtanh.f32 %v2024_v37 }
 0x354   : > { %v1961_v41 = vpop.f32.mrf.mxu2 }
 0x355   : > { %v1962_v52 = vadd.f32 %v1961_v41, %v4269_v8 }
 0x356   : > { %v2029_v54 = vpop.f32.mrf.mxu3 }
 0x357   : > { %v2598_v50 = vpop.eup %2597  ;;  %v2027_v53 = vadd.f32 %v2026_v13, %v1962_v52 }
 0x358   : > { %2202 = vst.msk [vmem:[%s3643_s13 + $0xd8] sm:$0xff] %vm2180_vm2, %v2598_v50 }
 0x359   : > { %2599 = vtanh.f32 %v2027_v53 }
 0x35c   : > { %v1964_v59 = vpop.f32.mrf.mxu2 }
 0x35d   : > { %v1965_v61 = vadd.f32 %v1964_v59, %v4269_v8 }
 0x35e   : > { %v2032_v42 = vpop.f32.mrf.mxu3 }
 0x35f   : > { %v2600_v46 = vpop.eup %2599  ;;  %v2030_v22 = vadd.f32 %v2029_v54, %v1965_v61 }
 0x360   : > { %2209 = vst.msk [vmem:[%s3643_s13 + $0x110] sm:$0xff] %vm2180_vm2, %v2600_v46 }
 0x361   : > { %2601 = vtanh.f32 %v2030_v22 }
 0x364   : > { %v1967_v62 = vpop.f32.mrf.mxu2 }
 0x365   : > { %v1968_v55 = vadd.f32 %v1967_v62, %v4269_v8 }
 0x366   : > { %v2035_v57 = vpop.f32.mrf.mxu3 }
 0x367   : > { %v2602_v20 = vpop.eup %2601  ;;  %v2033_v3 = vadd.f32 %v2032_v42, %v1968_v55 }
 0x368   : > { %2216 = vst.msk [vmem:[%s3643_s13 + $0x148] sm:$0xff] %vm2180_vm2, %v2602_v20 }
 0x369   : > { %2603 = vtanh.f32 %v2033_v3 }
 0x36c   : > { %v1970_v0 = vpop.f32.mrf.mxu2 }
 0x36d   : > { %v1971_v9 = vadd.f32 %v1970_v0, %v4269_v8 }
 0x36e   : > { %v2038_v15 = vpop.f32.mrf.mxu3 }
 0x36f   : > { %v2604_v2 = vpop.eup %2603  ;;  %v2036_v27 = vadd.f32 %v2035_v57, %v1971_v9 }
 0x370   : > { %2223 = vst.msk [vmem:[%s3643_s13 + $0x180] sm:$0xff] %vm2180_vm2, %v2604_v2 }
 0x371   : > { %2605 = vtanh.f32 %v2036_v27 }
 0x374   : > { %v1973_v4 = vpop.f32.mrf.mxu2 }
 0x375   : > { %v1974_v28 = vadd.f32 %v1973_v4, %v4269_v8 }
 0x376   : > { %v2041_v6 = vpop.f32.mrf.mxu3 }
 0x377   : > { %v2606_v5 = vpop.eup %2605  ;;  %v2039_v7 = vadd.f32 %v2038_v15, %v1974_v28 }
 0x378   : > { %2230 = vst.msk [vmem:[%s3643_s13 + $0x1b8] sm:$0xff] %vm2180_vm2, %v2606_v5 }
 0x379   : > { %2607 = vtanh.f32 %v2039_v7 }
 0x37c   : > { %v1976_v10 = vpop.f32.mrf.mxu2 }
 0x37d   : > { %v1977_v30 = vadd.f32 %v1976_v10, %v4269_v8 }
 0x37e   : > { %v2044_v32 = vpop.f32.mrf.mxu3 }
 0x37f   : > { %v2608_v63 = vpop.eup %2607  ;;  %v2042_v16 = vadd.f32 %v2041_v6, %v1977_v30 }
 0x380   : > { %2237 = vst.msk [vmem:[%s3643_s13 + $0x1f0] sm:$0xff] %vm2180_vm2, %v2608_v63 }
 0x381   : > { %2609 = vtanh.f32 %v2042_v16 }
 0x384   : > { %v1979_v17 = vpop.f32.mrf.mxu2 }
 0x385   : > { %v1980_v12 = vadd.f32 %v1979_v17, %v4269_v8 }
 0x386   : > { %v2047_v14 = vpop.f32.mrf.mxu3 }
 0x387   : > { %v2610_v19 = vpop.eup %2609  ;;  %v2045_v47 = vadd.f32 %v2044_v32, %v1980_v12 }
 0x388   : > { %2244 = vst.msk [vmem:[%s3643_s13 + $0x228] sm:$0xff] %vm2180_vm2, %v2610_v19 }
 0x389   : > { %2611 = vtanh.f32 %v2045_v47 }
 0x38c   : > { %v1982_v21 = vpop.f32.mrf.mxu2 }
 0x38d   : > { %v1983_v51 = vadd.f32 %v1982_v21, %v4269_v8 }
 0x38e   : > { %v2050_v48 = vpop.f32.mrf.mxu3 }
 0x38f   : > { %v2612_v58 = vpop.eup %2611  ;;  %v2048_v24 = vadd.f32 %v2047_v14, %v1983_v51 }
 0x390   : > { %2251 = vst.msk [vmem:[%s3643_s13 + $0x260] sm:$0xff] %vm2180_vm2, %v2612_v58 }
 0x391   : > { %2613 = vtanh.f32 %v2048_v24 }
 0x394   : > { %v1985_v26 = vpop.f32.mrf.mxu2 }
 0x395   : > { %v1986_v38 = vadd.f32 %v1985_v26, %v4269_v8 }
 0x396   : > { %v2053_v1 = vpop.f32.mrf.mxu3 }
 0x397   : > { %v2614_v29 = vpop.eup %2613  ;;  %v2051_v31 = vadd.f32 %v2050_v48, %v1986_v38 }
 0x398   : > { %2258 = vst.msk [vmem:[%s3643_s13 + $0x298] sm:$0xff] %vm2180_vm2, %v2614_v29 }
 0x399   : > { %2615 = vtanh.f32 %v2051_v31 }
 0x39c   : > { %v1988_v40 = vpop.f32.mrf.mxu2 }
 0x39d   : > { %v1989_v23 = vadd.f32 %v1988_v40, %v4269_v8 }
 0x39e   : > { %v2056_v49 = vpop.f32.mrf.mxu3 }
 0x39f   : > { %v2616_v25 = vpop.eup %2615  ;;  %v2054_v11 = vadd.f32 %v2053_v1, %v1989_v23 }
 0x3a0   : > { %2265 = vst.msk [vmem:[%s3643_s13 + $0x2d0] sm:$0xff] %vm2180_vm2, %v2616_v25 }
 0x3a1   : > { %2617 = vtanh.f32 %v2054_v11 }
 0x3a4   : > { %v1991_v56 = vpop.f32.mrf.mxu2 }
 0x3a5   : > { %v1992_v33 = vadd.f32 %v1991_v56, %v4269_v8 }
 0x3a6   : > { %v2059_v39 = vpop.f32.mrf.mxu3 }
 0x3a7   : > { %v2618_v34 = vpop.eup %2617  ;;  %v2057_v60 = vadd.f32 %v2056_v49, %v1992_v33 }
 0x3a8   : > { %2272 = vst.msk [vmem:[%s3643_s13 + $0x308] sm:$0xff] %vm2180_vm2, %v2618_v34 }
 0x3a9   : > { %2619 = vtanh.f32 %v2057_v60 }
 0x3ac   : > { %v1994_v35 = vpop.f32.mrf.mxu2 }
 0x3ad   : > { %v1995_v36 = vadd.f32 %v1994_v35, %v4269_v8 }
 0x3af   : > { %v2620_v43 = vpop.eup %2619  ;;  %v2060_v44 = vadd.f32 %v2059_v39, %v1995_v36 }
 0x3b0   : > { %2279 = vst.msk [vmem:[%s3643_s13 + $0x340] sm:$0xff] %vm2180_vm2, %v2620_v43 }
 0x3b1   : > { %2621 = vtanh.f32 %v2060_v44 }
 0x3b7   : > { %v2622_v45 = vpop.eup %2621 }
 0x3b8   : > { %2286 = vst.msk [vmem:[%s3643_s13 + $0x378] sm:$0xff] %vm2180_vm2, %v2622_v45 }
 0x3b9 PF: > { %s17_s24 = sadd.s32 1, %s2630_s24  }
 0x3ba   : > { %p14_p4 = scmp.ge.s32.totalorder %s17_s24, 4  }
 0x3bc   :  { %16 = sbr.rel (!%p14_p4) target bundleno = 1 (0x1), region = 78 }

</bundles_post_ra>
